<compile_context>
chip_gen: v5e
topology: v5e:2x2
jax: 0.10.0
libtpu: 0.0.40
codegen_flags: <defaults>
</compile_context>

<pallas_src>
import jax
import jax.numpy as jnp
from jax.experimental import pallas as pl
from jax.experimental.pallas import tpu as pltpu


# ---------------------------------------------------------------------------
# Fused kernel: time-batched GCN stack + global mean pool + LSTM + FC.
#   GCN layer l : H = relu( A_block @ (H @ W_l) + b_l )      (A_block = I_T (x) A_hat)
#   pool        : pooled = P_block @ H                       (P_block = I_T (x) pool_mat)
#   LSTM        : PyTorch gate order i, f, g, o; only last hidden state feeds fc.
# ---------------------------------------------------------------------------
def tgn_fused_kernel(x_ref, ablk_ref, pblk_ref, w0_ref, wr_ref, b_ref,
                     wih_ref, whh_ref, blstm_ref, wfc_ref, bfc_ref, o_ref):
    a = ablk_ref[...]                                    # (T*N, T*N) block-diagonal

    # ---- GCN stack, time-batched (reference association: A @ (X @ W)) ----
    h = jnp.dot(x_ref[...], w0_ref[...], preferred_element_type=jnp.float32)
    h = jnp.maximum(jnp.dot(a, h, preferred_element_type=jnp.float32) + b_ref[0], 0.0)
    for l in range(wr_ref.shape[0]):                     # remaining HID->HID convs
        hw = jnp.dot(h, wr_ref[l], preferred_element_type=jnp.float32)
        h = jnp.maximum(jnp.dot(a, hw, preferred_element_type=jnp.float32) + b_ref[l + 1],
                        0.0)

    # ---- Global mean pool for all timesteps at once: (T*G, H), time-major rows ----
    pooled = jnp.dot(pblk_ref[...], h, preferred_element_type=jnp.float32)

    # ---- LSTM (batch_first, single layer) + final Linear ----
    B = o_ref.shape[0]
    H = whh_ref.shape[0]
    T = pooled.shape[0] // B

    # Input projection for ALL timesteps in one lane-dense matmul (off the recurrent path).
    zx_all = (jnp.dot(pooled, wih_ref[...], preferred_element_type=jnp.float32)
              + blstm_ref[...])                          # (T*B, 4H)

    whh = whh_ref[...]                                   # (H, 4H), loaded exactly once
    h_t = jnp.zeros((B, H), jnp.float32)
    c_t = jnp.zeros((B, H), jnp.float32)

    # Fully unrolled recurrence (T small & static): one MXU push per step, gate
    # extraction via static lane slices (PyTorch gate order: i, f, g, o).
    for t in range(T):
        r0 = t * B
        z = zx_all[r0:r0 + B, :] + jnp.dot(h_t, whh, preferred_element_type=jnp.float32)
        i_g = jax.nn.sigmoid(z[:, 0:H])
        f_g = jax.nn.sigmoid(z[:, H:2 * H])
        g_g = jnp.tanh(z[:, 2 * H:3 * H])
        o_g = jax.nn.sigmoid(z[:, 3 * H:4 * H])
        c_t = f_g * c_t + i_g * g_g
        h_t = o_g * jnp.tanh(c_t)

    # TODO(synk): dropout layers are identity in eval mode; training-mode dropout not implemented.
    o_ref[...] = (jnp.dot(h_t, wfc_ref[...], preferred_element_type=jnp.float32)
                  + bfc_ref[...])


# ---------------------------------------------------------------------------
# One-time (per-model) packing: conv weight stacks, Kronecker time-batching
# operators, LSTM bias layout.  Done OUTSIDE the jitted forward.
# ---------------------------------------------------------------------------
def pack_model(params, a_hat, pool_mat, T):
    convs = list(params["convs"]) + list(params["additional_convs"])
    w0 = convs[0][0]
    hid = w0.shape[1]
    eye_t = jnp.eye(T, dtype=jnp.float32)
    return {
        "a_block": jnp.kron(eye_t, a_hat).astype(jnp.float32),       # (T*N, T*N)
        "p_block": jnp.kron(eye_t, pool_mat).astype(jnp.float32),    # (T*G, T*N)
        "w0": w0,                                                     # (IN, H)
        "w_rest": jnp.stack([w for (w, _) in convs[1:]], axis=0),     # (L-1, H, H)
        "b_all": jnp.stack([b.reshape(1, hid) for (_, b) in convs], axis=0),  # (L, 1, H)
        "w_ih": params["w_ih"],                                       # (H, 4H)
        "w_hh": params["w_hh"],                                       # (H, 4H)
        "b_lstm": params["b_lstm"].reshape(1, 4 * hid),               # (1, 4H)
        "w_fc": params["w_fc"],                                       # (H, OUT)
        "b_fc": params["b_fc"],                                       # (1, OUT)
    }


# ---------------------------------------------------------------------------
# Full forward: one fused pallas_call, everything resident in VMEM.
# ---------------------------------------------------------------------------
def temporal_graph_network_forward(packed, x_seq_nodes):
    """x_seq_nodes: (T, N, input_dim) node features per snapshot (shared graph structure)."""
    T, N, in_dim = x_seq_nodes.shape
    out_dim = packed["w_fc"].shape[1]
    G = packed["p_block"].shape[0] // T

    x_all = x_seq_nodes.reshape(T * N, in_dim)           # time-major node rows
    vmem = pl.BlockSpec(memory_space=pltpu.MemorySpace.VMEM)

    return pl.pallas_call(
        tgn_fused_kernel,
        out_shape=jax.ShapeDtypeStruct((G, out_dim), jnp.float32),
        in_specs=[vmem] * 11,
        out_specs=vmem,
    )(x_all, packed["a_block"], packed["p_block"], packed["w0"], packed["w_rest"],
      packed["b_all"], packed["w_ih"], packed["w_hh"], packed["b_lstm"],
      packed["w_fc"], packed["b_fc"])


# ---------------------------------------------------------------------------
# Pure-JAX reference (same math) for a correctness check.
# ---------------------------------------------------------------------------
def reference_forward(params, x_seq_nodes, a_hat, pool_mat):
    T = x_seq_nodes.shape[0]
    pooled = []
    for t in range(T):
        x = x_seq_nodes[t]
        for (w, b) in params["convs"] + params["additional_convs"]:
            x = jnp.maximum(a_hat @ (x @ w) + b, 0.0)
        pooled.append(pool_mat @ x)
    x_seq = jnp.stack(pooled, axis=0)  # (T, G, H)
    T_, B, H = x_seq.shape
    h = jnp.zeros((B, H), jnp.float32)
    c = jnp.zeros((B, H), jnp.float32)
    for t in range(T_):
        z = x_seq[t] @ params["w_ih"] + h @ params["w_hh"] + params["b_lstm"]
        i_g = jax.nn.sigmoid(z[:, 0:H])
        f_g = jax.nn.sigmoid(z[:, H:2 * H])
        g_g = jnp.tanh(z[:, 2 * H:3 * H])
        o_g = jax.nn.sigmoid(z[:, 3 * H:4 * H])
        c = f_g * c + i_g * g_g
        h = o_g * jnp.tanh(c)
    return h @ params["w_fc"] + params["b_fc"]


if __name__ == "__main__":
    # Small deterministic problem: T=8 snapshots, 2 graphs x 8 nodes = 16 nodes,
    # input_dim=4, hidden_dim=32, output_dim=8.
    T, G, NODES_PER_GRAPH = 8, 2, 8
    N = G * NODES_PER_GRAPH
    IN_DIM, HID, OUT_DIM = 4, 32, 8

    key = jax.random.PRNGKey(0)
    keys = jax.random.split(key, 16)

    def winit(k, shape, scale=0.1):
        return (scale * jax.random.normal(k, shape)).astype(jnp.float32)

    params = {
        "convs": [
            (winit(keys[0], (IN_DIM, HID)), winit(keys[1], (1, HID), 0.01)),
            (winit(keys[2], (HID, HID)), winit(keys[3], (1, HID), 0.01)),
            (winit(keys[4], (HID, HID)), winit(keys[5], (1, HID), 0.01)),
        ],
        "additional_convs": [
            (winit(keys[6], (HID, HID)), winit(keys[7], (1, HID), 0.01)),
            (winit(keys[8], (HID, HID)), winit(keys[9], (1, HID), 0.01)),
        ],
        "w_ih": winit(keys[10], (HID, 4 * HID)),
        "w_hh": winit(keys[11], (HID, 4 * HID)),
        "b_lstm": winit(keys[12], (1, 4 * HID), 0.01),  # b_ih + b_hh folded together
        "w_fc": winit(keys[13], (HID, OUT_DIM)),
        "b_fc": winit(keys[14], (1, OUT_DIM), 0.01),
    }

    # Node features per snapshot.
    x_seq_nodes = winit(keys[15], (T, N, IN_DIM), 1.0)

    # Graph structure: ring within each graph (undirected), shared across snapshots.
    src_list, dst_list = [], []
    for g in range(G):
        base = g * NODES_PER_GRAPH
        for i in range(NODES_PER_GRAPH):
            src_list.append(base + i)
            dst_list.append(base + (i + 1) % NODES_PER_GRAPH)
    src = jnp.array(src_list, dtype=jnp.int32)
    dst = jnp.array(dst_list, dtype=jnp.int32)

    # GCN normalization: A_hat = D^{-1/2} (A + I) D^{-1/2}  (dense, built as glue)
    A = jnp.zeros((N, N), jnp.float32).at[src, dst].set(1.0).at[dst, src].set(1.0)
    A = A + jnp.eye(N, dtype=jnp.float32)
    deg = A.sum(axis=1)
    dinv = 1.0 / jnp.sqrt(deg)
    a_hat = (dinv[:, None] * A * dinv[None, :]).astype(jnp.float32)

    # global_mean_pool as a matmul: P[g, n] = 1/|graph g| if node n in graph g.
    batch = jnp.repeat(jnp.arange(G, dtype=jnp.int32), NODES_PER_GRAPH)
    pool_mat = ((batch[None, :] == jnp.arange(G, dtype=jnp.int32)[:, None])
                .astype(jnp.float32) / NODES_PER_GRAPH)

    # One-time packing (outside the jitted forward).
    packed = jax.tree_util.tree_map(jax.block_until_ready, pack_model(params, a_hat, pool_mat, T))

    fwd = jax.jit(temporal_graph_network_forward)
    out = fwd(packed, x_seq_nodes)
    out = jax.block_until_ready(out)

    ref = reference_forward(params, x_seq_nodes, a_hat, pool_mat)
    assert out.shape == (G, OUT_DIM), out.shape
    assert jnp.allclose(out, ref, atol=1e-4, rtol=1e-4), (out, ref)

    print("KERNEL_OK")
</pallas_src>

<mosaic_0001>
module attributes {stable_mosaic.version = 11 : i64} {
  func.func @tgn_fused_kernel(%arg0: memref<128x4xf32, #tpu.memory_space<vmem>>, %arg1: memref<128x128xf32, #tpu.memory_space<vmem>>, %arg2: memref<16x128xf32, #tpu.memory_space<vmem>>, %arg3: memref<4x32xf32, #tpu.memory_space<vmem>>, %arg4: memref<4x32x32xf32, #tpu.memory_space<vmem>>, %arg5: memref<5x1x32xf32, #tpu.memory_space<vmem>>, %arg6: memref<32x128xf32, #tpu.memory_space<vmem>>, %arg7: memref<32x128xf32, #tpu.memory_space<vmem>>, %arg8: memref<1x128xf32, #tpu.memory_space<vmem>>, %arg9: memref<32x8xf32, #tpu.memory_space<vmem>>, %arg10: memref<1x8xf32, #tpu.memory_space<vmem>>, %arg11: memref<2x8xf32, #tpu.memory_space<vmem>>) attributes {dimension_semantics = [], scalar_prefetch = 0 : i64, scratch_operands = 0 : i64, tpu.core_type = #tpu.core_type<tc>} {
    %c0 = arith.constant 0 : index
    %c0_0 = arith.constant 0 : index
    %0 = vector.load %arg1[%c0, %c0_0] : memref<128x128xf32, #tpu.memory_space<vmem>>, vector<128x128xf32>
    %c0_1 = arith.constant 0 : index
    %c0_2 = arith.constant 0 : index
    %1 = vector.load %arg0[%c0_1, %c0_2] : memref<128x4xf32, #tpu.memory_space<vmem>>, vector<128x4xf32>
    %c0_3 = arith.constant 0 : index
    %c0_4 = arith.constant 0 : index
    %2 = vector.load %arg3[%c0_3, %c0_4] : memref<4x32xf32, #tpu.memory_space<vmem>>, vector<4x32xf32>
    %cst = arith.constant dense<0.000000e+00> : vector<128x32xf32>
    %3 = tpu.matmul %1, %2, %cst {dimension_numbers = #tpu.dot_dimension_numbers<[1], [0], [0], [1], [0, 0, 1, 1], [], []>} : vector<128x4xf32>, vector<4x32xf32>, vector<128x32xf32> -> vector<128x32xf32>
    %cst_5 = arith.constant dense<0.000000e+00> : vector<128x32xf32>
    %4 = tpu.matmul %0, %3, %cst_5 {dimension_numbers = #tpu.dot_dimension_numbers<[1], [0], [0], [1], [0, 0, 1, 1], [], []>} : vector<128x128xf32>, vector<128x32xf32>, vector<128x32xf32> -> vector<128x32xf32>
    %c0_6 = arith.constant 0 : index
    %c0_7 = arith.constant 0 : index
    %c0_8 = arith.constant 0 : index
    %5 = vector.load %arg5[%c0_6, %c0_7, %c0_8] : memref<5x1x32xf32, #tpu.memory_space<vmem>>, vector<1x1x32xf32>
    %6 = vector.shape_cast %5 : vector<1x1x32xf32> to vector<1x32xf32>
    %7 = vector.broadcast %6 : vector<1x32xf32> to vector<128x32xf32>
    %8 = arith.addf %4, %7 : vector<128x32xf32>
    %cst_9 = arith.constant 0.000000e+00 : f32
    %9 = vector.broadcast %cst_9 : f32 to vector<128x32xf32>
    %10 = arith.maximumf %8, %9 : vector<128x32xf32>
    %c0_10 = arith.constant 0 : index
    %c0_11 = arith.constant 0 : index
    %c0_12 = arith.constant 0 : index
    %11 = vector.load %arg4[%c0_10, %c0_11, %c0_12] : memref<4x32x32xf32, #tpu.memory_space<vmem>>, vector<1x32x32xf32>
    %12 = vector.shape_cast %11 : vector<1x32x32xf32> to vector<32x32xf32>
    %cst_13 = arith.constant dense<0.000000e+00> : vector<128x32xf32>
    %13 = tpu.matmul %10, %12, %cst_13 {dimension_numbers = #tpu.dot_dimension_numbers<[1], [0], [0], [1], [0, 0, 1, 1], [], []>} : vector<128x32xf32>, vector<32x32xf32>, vector<128x32xf32> -> vector<128x32xf32>
    %cst_14 = arith.constant dense<0.000000e+00> : vector<128x32xf32>
    %14 = tpu.matmul %0, %13, %cst_14 {dimension_numbers = #tpu.dot_dimension_numbers<[1], [0], [0], [1], [0, 0, 1, 1], [], []>} : vector<128x128xf32>, vector<128x32xf32>, vector<128x32xf32> -> vector<128x32xf32>
    %c1 = arith.constant 1 : index
    %c0_15 = arith.constant 0 : index
    %c0_16 = arith.constant 0 : index
    %15 = vector.load %arg5[%c1, %c0_15, %c0_16] : memref<5x1x32xf32, #tpu.memory_space<vmem>>, vector<1x1x32xf32>
    %16 = vector.shape_cast %15 : vector<1x1x32xf32> to vector<1x32xf32>
    %17 = vector.broadcast %16 : vector<1x32xf32> to vector<128x32xf32>
    %18 = arith.addf %14, %17 : vector<128x32xf32>
    %cst_17 = arith.constant 0.000000e+00 : f32
    %19 = vector.broadcast %cst_17 : f32 to vector<128x32xf32>
    %20 = arith.maximumf %18, %19 : vector<128x32xf32>
    %c1_18 = arith.constant 1 : index
    %c0_19 = arith.constant 0 : index
    %c0_20 = arith.constant 0 : index
    %21 = vector.load %arg4[%c1_18, %c0_19, %c0_20] : memref<4x32x32xf32, #tpu.memory_space<vmem>>, vector<1x32x32xf32>
    %22 = vector.shape_cast %21 : vector<1x32x32xf32> to vector<32x32xf32>
    %cst_21 = arith.constant dense<0.000000e+00> : vector<128x32xf32>
    %23 = tpu.matmul %20, %22, %cst_21 {dimension_numbers = #tpu.dot_dimension_numbers<[1], [0], [0], [1], [0, 0, 1, 1], [], []>} : vector<128x32xf32>, vector<32x32xf32>, vector<128x32xf32> -> vector<128x32xf32>
    %cst_22 = arith.constant dense<0.000000e+00> : vector<128x32xf32>
    %24 = tpu.matmul %0, %23, %cst_22 {dimension_numbers = #tpu.dot_dimension_numbers<[1], [0], [0], [1], [0, 0, 1, 1], [], []>} : vector<128x128xf32>, vector<128x32xf32>, vector<128x32xf32> -> vector<128x32xf32>
    %c2 = arith.constant 2 : index
    %c0_23 = arith.constant 0 : index
    %c0_24 = arith.constant 0 : index
    %25 = vector.load %arg5[%c2, %c0_23, %c0_24] : memref<5x1x32xf32, #tpu.memory_space<vmem>>, vector<1x1x32xf32>
    %26 = vector.shape_cast %25 : vector<1x1x32xf32> to vector<1x32xf32>
    %27 = vector.broadcast %26 : vector<1x32xf32> to vector<128x32xf32>
    %28 = arith.addf %24, %27 : vector<128x32xf32>
    %cst_25 = arith.constant 0.000000e+00 : f32
    %29 = vector.broadcast %cst_25 : f32 to vector<128x32xf32>
    %30 = arith.maximumf %28, %29 : vector<128x32xf32>
    %c2_26 = arith.constant 2 : index
    %c0_27 = arith.constant 0 : index
    %c0_28 = arith.constant 0 : index
    %31 = vector.load %arg4[%c2_26, %c0_27, %c0_28] : memref<4x32x32xf32, #tpu.memory_space<vmem>>, vector<1x32x32xf32>
    %32 = vector.shape_cast %31 : vector<1x32x32xf32> to vector<32x32xf32>
    %cst_29 = arith.constant dense<0.000000e+00> : vector<128x32xf32>
    %33 = tpu.matmul %30, %32, %cst_29 {dimension_numbers = #tpu.dot_dimension_numbers<[1], [0], [0], [1], [0, 0, 1, 1], [], []>} : vector<128x32xf32>, vector<32x32xf32>, vector<128x32xf32> -> vector<128x32xf32>
    %cst_30 = arith.constant dense<0.000000e+00> : vector<128x32xf32>
    %34 = tpu.matmul %0, %33, %cst_30 {dimension_numbers = #tpu.dot_dimension_numbers<[1], [0], [0], [1], [0, 0, 1, 1], [], []>} : vector<128x128xf32>, vector<128x32xf32>, vector<128x32xf32> -> vector<128x32xf32>
    %c3 = arith.constant 3 : index
    %c0_31 = arith.constant 0 : index
    %c0_32 = arith.constant 0 : index
    %35 = vector.load %arg5[%c3, %c0_31, %c0_32] : memref<5x1x32xf32, #tpu.memory_space<vmem>>, vector<1x1x32xf32>
    %36 = vector.shape_cast %35 : vector<1x1x32xf32> to vector<1x32xf32>
    %37 = vector.broadcast %36 : vector<1x32xf32> to vector<128x32xf32>
    %38 = arith.addf %34, %37 : vector<128x32xf32>
    %cst_33 = arith.constant 0.000000e+00 : f32
    %39 = vector.broadcast %cst_33 : f32 to vector<128x32xf32>
    %40 = arith.maximumf %38, %39 : vector<128x32xf32>
    %c3_34 = arith.constant 3 : index
    %c0_35 = arith.constant 0 : index
    %c0_36 = arith.constant 0 : index
    %41 = vector.load %arg4[%c3_34, %c0_35, %c0_36] : memref<4x32x32xf32, #tpu.memory_space<vmem>>, vector<1x32x32xf32>
    %42 = vector.shape_cast %41 : vector<1x32x32xf32> to vector<32x32xf32>
    %cst_37 = arith.constant dense<0.000000e+00> : vector<128x32xf32>
    %43 = tpu.matmul %40, %42, %cst_37 {dimension_numbers = #tpu.dot_dimension_numbers<[1], [0], [0], [1], [0, 0, 1, 1], [], []>} : vector<128x32xf32>, vector<32x32xf32>, vector<128x32xf32> -> vector<128x32xf32>
    %cst_38 = arith.constant dense<0.000000e+00> : vector<128x32xf32>
    %44 = tpu.matmul %0, %43, %cst_38 {dimension_numbers = #tpu.dot_dimension_numbers<[1], [0], [0], [1], [0, 0, 1, 1], [], []>} : vector<128x128xf32>, vector<128x32xf32>, vector<128x32xf32> -> vector<128x32xf32>
    %c4 = arith.constant 4 : index
    %c0_39 = arith.constant 0 : index
    %c0_40 = arith.constant 0 : index
    %45 = vector.load %arg5[%c4, %c0_39, %c0_40] : memref<5x1x32xf32, #tpu.memory_space<vmem>>, vector<1x1x32xf32>
    %46 = vector.shape_cast %45 : vector<1x1x32xf32> to vector<1x32xf32>
    %47 = vector.broadcast %46 : vector<1x32xf32> to vector<128x32xf32>
    %48 = arith.addf %44, %47 : vector<128x32xf32>
    %cst_41 = arith.constant 0.000000e+00 : f32
    %49 = vector.broadcast %cst_41 : f32 to vector<128x32xf32>
    %50 = arith.maximumf %48, %49 : vector<128x32xf32>
    %c0_42 = arith.constant 0 : index
    %c0_43 = arith.constant 0 : index
    %51 = vector.load %arg2[%c0_42, %c0_43] : memref<16x128xf32, #tpu.memory_space<vmem>>, vector<16x128xf32>
    %cst_44 = arith.constant dense<0.000000e+00> : vector<16x32xf32>
    %52 = tpu.matmul %51, %50, %cst_44 {dimension_numbers = #tpu.dot_dimension_numbers<[1], [0], [0], [1], [0, 0, 1, 1], [], []>} : vector<16x128xf32>, vector<128x32xf32>, vector<16x32xf32> -> vector<16x32xf32>
    %c0_45 = arith.constant 0 : index
    %c0_46 = arith.constant 0 : index
    %53 = vector.load %arg6[%c0_45, %c0_46] : memref<32x128xf32, #tpu.memory_space<vmem>>, vector<32x128xf32>
    %cst_47 = arith.constant dense<0.000000e+00> : vector<16x128xf32>
    %54 = tpu.matmul %52, %53, %cst_47 {dimension_numbers = #tpu.dot_dimension_numbers<[1], [0], [0], [1], [0, 0, 1, 1], [], []>} : vector<16x32xf32>, vector<32x128xf32>, vector<16x128xf32> -> vector<16x128xf32>
    %c0_48 = arith.constant 0 : index
    %c0_49 = arith.constant 0 : index
    %55 = vector.load %arg8[%c0_48, %c0_49] : memref<1x128xf32, #tpu.memory_space<vmem>>, vector<1x128xf32>
    %56 = vector.broadcast %55 : vector<1x128xf32> to vector<16x128xf32>
    %57 = arith.addf %54, %56 : vector<16x128xf32>
    %c0_50 = arith.constant 0 : index
    %c0_51 = arith.constant 0 : index
    %58 = vector.load %arg7[%c0_50, %c0_51] : memref<32x128xf32, #tpu.memory_space<vmem>>, vector<32x128xf32>
    %cst_52 = arith.constant 0.000000e+00 : f32
    %59 = vector.broadcast %cst_52 : f32 to vector<2x32xf32>
    %cst_53 = arith.constant 0.000000e+00 : f32
    %60 = vector.broadcast %cst_53 : f32 to vector<2x32xf32>
    %61 = vector.extract_strided_slice %57 {offsets = [0, 0], sizes = [2, 128], strides = [1, 1]} : vector<16x128xf32> to vector<2x128xf32>
    %cst_54 = arith.constant dense<0.000000e+00> : vector<2x128xf32>
    %62 = tpu.matmul %59, %58, %cst_54 {dimension_numbers = #tpu.dot_dimension_numbers<[1], [0], [0], [1], [0, 0, 1, 1], [], []>} : vector<2x32xf32>, vector<32x128xf32>, vector<2x128xf32> -> vector<2x128xf32>
    %63 = arith.addf %61, %62 : vector<2x128xf32>
    %64 = vector.extract_strided_slice %63 {offsets = [0, 0], sizes = [2, 32], strides = [1, 1]} : vector<2x128xf32> to vector<2x32xf32>
    %65 = arith.negf %64 : vector<2x32xf32>
    %66 = math.exp %65 : vector<2x32xf32>
    %cst_55 = arith.constant 1.000000e+00 : f32
    %67 = vector.broadcast %cst_55 : f32 to vector<2x32xf32>
    %68 = arith.addf %67, %66 : vector<2x32xf32>
    %69 = arith.divf %67, %68 : vector<2x32xf32>
    %70 = vector.extract_strided_slice %63 {offsets = [0, 32], sizes = [2, 32], strides = [1, 1]} : vector<2x128xf32> to vector<2x32xf32>
    %71 = arith.negf %70 : vector<2x32xf32>
    %72 = math.exp %71 : vector<2x32xf32>
    %cst_56 = arith.constant 1.000000e+00 : f32
    %73 = vector.broadcast %cst_56 : f32 to vector<2x32xf32>
    %74 = arith.addf %73, %72 : vector<2x32xf32>
    %75 = arith.divf %73, %74 : vector<2x32xf32>
    %76 = vector.extract_strided_slice %63 {offsets = [0, 64], sizes = [2, 32], strides = [1, 1]} : vector<2x128xf32> to vector<2x32xf32>
    %77 = math.tanh %76 : vector<2x32xf32>
    %78 = vector.extract_strided_slice %63 {offsets = [0, 96], sizes = [2, 32], strides = [1, 1]} : vector<2x128xf32> to vector<2x32xf32>
    %79 = arith.negf %78 : vector<2x32xf32>
    %80 = math.exp %79 : vector<2x32xf32>
    %cst_57 = arith.constant 1.000000e+00 : f32
    %81 = vector.broadcast %cst_57 : f32 to vector<2x32xf32>
    %82 = arith.addf %81, %80 : vector<2x32xf32>
    %83 = arith.divf %81, %82 : vector<2x32xf32>
    %84 = arith.mulf %75, %60 : vector<2x32xf32>
    %85 = arith.mulf %69, %77 : vector<2x32xf32>
    %86 = arith.addf %84, %85 : vector<2x32xf32>
    %87 = math.tanh %86 : vector<2x32xf32>
    %88 = arith.mulf %83, %87 : vector<2x32xf32>
    %89 = vector.extract_strided_slice %57 {offsets = [2, 0], sizes = [2, 128], strides = [1, 1]} : vector<16x128xf32> to vector<2x128xf32>
    %cst_58 = arith.constant dense<0.000000e+00> : vector<2x128xf32>
    %90 = tpu.matmul %88, %58, %cst_58 {dimension_numbers = #tpu.dot_dimension_numbers<[1], [0], [0], [1], [0, 0, 1, 1], [], []>} : vector<2x32xf32>, vector<32x128xf32>, vector<2x128xf32> -> vector<2x128xf32>
    %91 = arith.addf %89, %90 : vector<2x128xf32>
    %92 = vector.extract_strided_slice %91 {offsets = [0, 0], sizes = [2, 32], strides = [1, 1]} : vector<2x128xf32> to vector<2x32xf32>
    %93 = arith.negf %92 : vector<2x32xf32>
    %94 = math.exp %93 : vector<2x32xf32>
    %cst_59 = arith.constant 1.000000e+00 : f32
    %95 = vector.broadcast %cst_59 : f32 to vector<2x32xf32>
    %96 = arith.addf %95, %94 : vector<2x32xf32>
    %97 = arith.divf %95, %96 : vector<2x32xf32>
    %98 = vector.extract_strided_slice %91 {offsets = [0, 32], sizes = [2, 32], strides = [1, 1]} : vector<2x128xf32> to vector<2x32xf32>
    %99 = arith.negf %98 : vector<2x32xf32>
    %100 = math.exp %99 : vector<2x32xf32>
    %cst_60 = arith.constant 1.000000e+00 : f32
    %101 = vector.broadcast %cst_60 : f32 to vector<2x32xf32>
    %102 = arith.addf %101, %100 : vector<2x32xf32>
    %103 = arith.divf %101, %102 : vector<2x32xf32>
    %104 = vector.extract_strided_slice %91 {offsets = [0, 64], sizes = [2, 32], strides = [1, 1]} : vector<2x128xf32> to vector<2x32xf32>
    %105 = math.tanh %104 : vector<2x32xf32>
    %106 = vector.extract_strided_slice %91 {offsets = [0, 96], sizes = [2, 32], strides = [1, 1]} : vector<2x128xf32> to vector<2x32xf32>
    %107 = arith.negf %106 : vector<2x32xf32>
    %108 = math.exp %107 : vector<2x32xf32>
    %cst_61 = arith.constant 1.000000e+00 : f32
    %109 = vector.broadcast %cst_61 : f32 to vector<2x32xf32>
    %110 = arith.addf %109, %108 : vector<2x32xf32>
    %111 = arith.divf %109, %110 : vector<2x32xf32>
    %112 = arith.mulf %103, %86 : vector<2x32xf32>
    %113 = arith.mulf %97, %105 : vector<2x32xf32>
    %114 = arith.addf %112, %113 : vector<2x32xf32>
    %115 = math.tanh %114 : vector<2x32xf32>
    %116 = arith.mulf %111, %115 : vector<2x32xf32>
    %117 = vector.extract_strided_slice %57 {offsets = [4, 0], sizes = [2, 128], strides = [1, 1]} : vector<16x128xf32> to vector<2x128xf32>
    %cst_62 = arith.constant dense<0.000000e+00> : vector<2x128xf32>
    %118 = tpu.matmul %116, %58, %cst_62 {dimension_numbers = #tpu.dot_dimension_numbers<[1], [0], [0], [1], [0, 0, 1, 1], [], []>} : vector<2x32xf32>, vector<32x128xf32>, vector<2x128xf32> -> vector<2x128xf32>
    %119 = arith.addf %117, %118 : vector<2x128xf32>
    %120 = vector.extract_strided_slice %119 {offsets = [0, 0], sizes = [2, 32], strides = [1, 1]} : vector<2x128xf32> to vector<2x32xf32>
    %121 = arith.negf %120 : vector<2x32xf32>
    %122 = math.exp %121 : vector<2x32xf32>
    %cst_63 = arith.constant 1.000000e+00 : f32
    %123 = vector.broadcast %cst_63 : f32 to vector<2x32xf32>
    %124 = arith.addf %123, %122 : vector<2x32xf32>
    %125 = arith.divf %123, %124 : vector<2x32xf32>
    %126 = vector.extract_strided_slice %119 {offsets = [0, 32], sizes = [2, 32], strides = [1, 1]} : vector<2x128xf32> to vector<2x32xf32>
    %127 = arith.negf %126 : vector<2x32xf32>
    %128 = math.exp %127 : vector<2x32xf32>
    %cst_64 = arith.constant 1.000000e+00 : f32
    %129 = vector.broadcast %cst_64 : f32 to vector<2x32xf32>
    %130 = arith.addf %129, %128 : vector<2x32xf32>
    %131 = arith.divf %129, %130 : vector<2x32xf32>
    %132 = vector.extract_strided_slice %119 {offsets = [0, 64], sizes = [2, 32], strides = [1, 1]} : vector<2x128xf32> to vector<2x32xf32>
    %133 = math.tanh %132 : vector<2x32xf32>
    %134 = vector.extract_strided_slice %119 {offsets = [0, 96], sizes = [2, 32], strides = [1, 1]} : vector<2x128xf32> to vector<2x32xf32>
    %135 = arith.negf %134 : vector<2x32xf32>
    %136 = math.exp %135 : vector<2x32xf32>
    %cst_65 = arith.constant 1.000000e+00 : f32
    %137 = vector.broadcast %cst_65 : f32 to vector<2x32xf32>
    %138 = arith.addf %137, %136 : vector<2x32xf32>
    %139 = arith.divf %137, %138 : vector<2x32xf32>
    %140 = arith.mulf %131, %114 : vector<2x32xf32>
    %141 = arith.mulf %125, %133 : vector<2x32xf32>
    %142 = arith.addf %140, %141 : vector<2x32xf32>
    %143 = math.tanh %142 : vector<2x32xf32>
    %144 = arith.mulf %139, %143 : vector<2x32xf32>
    %145 = vector.extract_strided_slice %57 {offsets = [6, 0], sizes = [2, 128], strides = [1, 1]} : vector<16x128xf32> to vector<2x128xf32>
    %cst_66 = arith.constant dense<0.000000e+00> : vector<2x128xf32>
    %146 = tpu.matmul %144, %58, %cst_66 {dimension_numbers = #tpu.dot_dimension_numbers<[1], [0], [0], [1], [0, 0, 1, 1], [], []>} : vector<2x32xf32>, vector<32x128xf32>, vector<2x128xf32> -> vector<2x128xf32>
    %147 = arith.addf %145, %146 : vector<2x128xf32>
    %148 = vector.extract_strided_slice %147 {offsets = [0, 0], sizes = [2, 32], strides = [1, 1]} : vector<2x128xf32> to vector<2x32xf32>
    %149 = arith.negf %148 : vector<2x32xf32>
    %150 = math.exp %149 : vector<2x32xf32>
    %cst_67 = arith.constant 1.000000e+00 : f32
    %151 = vector.broadcast %cst_67 : f32 to vector<2x32xf32>
    %152 = arith.addf %151, %150 : vector<2x32xf32>
    %153 = arith.divf %151, %152 : vector<2x32xf32>
    %154 = vector.extract_strided_slice %147 {offsets = [0, 32], sizes = [2, 32], strides = [1, 1]} : vector<2x128xf32> to vector<2x32xf32>
    %155 = arith.negf %154 : vector<2x32xf32>
    %156 = math.exp %155 : vector<2x32xf32>
    %cst_68 = arith.constant 1.000000e+00 : f32
    %157 = vector.broadcast %cst_68 : f32 to vector<2x32xf32>
    %158 = arith.addf %157, %156 : vector<2x32xf32>
    %159 = arith.divf %157, %158 : vector<2x32xf32>
    %160 = vector.extract_strided_slice %147 {offsets = [0, 64], sizes = [2, 32], strides = [1, 1]} : vector<2x128xf32> to vector<2x32xf32>
    %161 = math.tanh %160 : vector<2x32xf32>
    %162 = vector.extract_strided_slice %147 {offsets = [0, 96], sizes = [2, 32], strides = [1, 1]} : vector<2x128xf32> to vector<2x32xf32>
    %163 = arith.negf %162 : vector<2x32xf32>
    %164 = math.exp %163 : vector<2x32xf32>
    %cst_69 = arith.constant 1.000000e+00 : f32
    %165 = vector.broadcast %cst_69 : f32 to vector<2x32xf32>
    %166 = arith.addf %165, %164 : vector<2x32xf32>
    %167 = arith.divf %165, %166 : vector<2x32xf32>
    %168 = arith.mulf %159, %142 : vector<2x32xf32>
    %169 = arith.mulf %153, %161 : vector<2x32xf32>
    %170 = arith.addf %168, %169 : vector<2x32xf32>
    %171 = math.tanh %170 : vector<2x32xf32>
    %172 = arith.mulf %167, %171 : vector<2x32xf32>
    %173 = vector.extract_strided_slice %57 {offsets = [8, 0], sizes = [2, 128], strides = [1, 1]} : vector<16x128xf32> to vector<2x128xf32>
    %cst_70 = arith.constant dense<0.000000e+00> : vector<2x128xf32>
    %174 = tpu.matmul %172, %58, %cst_70 {dimension_numbers = #tpu.dot_dimension_numbers<[1], [0], [0], [1], [0, 0, 1, 1], [], []>} : vector<2x32xf32>, vector<32x128xf32>, vector<2x128xf32> -> vector<2x128xf32>
    %175 = arith.addf %173, %174 : vector<2x128xf32>
    %176 = vector.extract_strided_slice %175 {offsets = [0, 0], sizes = [2, 32], strides = [1, 1]} : vector<2x128xf32> to vector<2x32xf32>
    %177 = arith.negf %176 : vector<2x32xf32>
    %178 = math.exp %177 : vector<2x32xf32>
    %cst_71 = arith.constant 1.000000e+00 : f32
    %179 = vector.broadcast %cst_71 : f32 to vector<2x32xf32>
    %180 = arith.addf %179, %178 : vector<2x32xf32>
    %181 = arith.divf %179, %180 : vector<2x32xf32>
    %182 = vector.extract_strided_slice %175 {offsets = [0, 32], sizes = [2, 32], strides = [1, 1]} : vector<2x128xf32> to vector<2x32xf32>
    %183 = arith.negf %182 : vector<2x32xf32>
    %184 = math.exp %183 : vector<2x32xf32>
    %cst_72 = arith.constant 1.000000e+00 : f32
    %185 = vector.broadcast %cst_72 : f32 to vector<2x32xf32>
    %186 = arith.addf %185, %184 : vector<2x32xf32>
    %187 = arith.divf %185, %186 : vector<2x32xf32>
    %188 = vector.extract_strided_slice %175 {offsets = [0, 64], sizes = [2, 32], strides = [1, 1]} : vector<2x128xf32> to vector<2x32xf32>
    %189 = math.tanh %188 : vector<2x32xf32>
    %190 = vector.extract_strided_slice %175 {offsets = [0, 96], sizes = [2, 32], strides = [1, 1]} : vector<2x128xf32> to vector<2x32xf32>
    %191 = arith.negf %190 : vector<2x32xf32>
    %192 = math.exp %191 : vector<2x32xf32>
    %cst_73 = arith.constant 1.000000e+00 : f32
    %193 = vector.broadcast %cst_73 : f32 to vector<2x32xf32>
    %194 = arith.addf %193, %192 : vector<2x32xf32>
    %195 = arith.divf %193, %194 : vector<2x32xf32>
    %196 = arith.mulf %187, %170 : vector<2x32xf32>
    %197 = arith.mulf %181, %189 : vector<2x32xf32>
    %198 = arith.addf %196, %197 : vector<2x32xf32>
    %199 = math.tanh %198 : vector<2x32xf32>
    %200 = arith.mulf %195, %199 : vector<2x32xf32>
    %201 = vector.extract_strided_slice %57 {offsets = [10, 0], sizes = [2, 128], strides = [1, 1]} : vector<16x128xf32> to vector<2x128xf32>
    %cst_74 = arith.constant dense<0.000000e+00> : vector<2x128xf32>
    %202 = tpu.matmul %200, %58, %cst_74 {dimension_numbers = #tpu.dot_dimension_numbers<[1], [0], [0], [1], [0, 0, 1, 1], [], []>} : vector<2x32xf32>, vector<32x128xf32>, vector<2x128xf32> -> vector<2x128xf32>
    %203 = arith.addf %201, %202 : vector<2x128xf32>
    %204 = vector.extract_strided_slice %203 {offsets = [0, 0], sizes = [2, 32], strides = [1, 1]} : vector<2x128xf32> to vector<2x32xf32>
    %205 = arith.negf %204 : vector<2x32xf32>
    %206 = math.exp %205 : vector<2x32xf32>
    %cst_75 = arith.constant 1.000000e+00 : f32
    %207 = vector.broadcast %cst_75 : f32 to vector<2x32xf32>
    %208 = arith.addf %207, %206 : vector<2x32xf32>
    %209 = arith.divf %207, %208 : vector<2x32xf32>
    %210 = vector.extract_strided_slice %203 {offsets = [0, 32], sizes = [2, 32], strides = [1, 1]} : vector<2x128xf32> to vector<2x32xf32>
    %211 = arith.negf %210 : vector<2x32xf32>
    %212 = math.exp %211 : vector<2x32xf32>
    %cst_76 = arith.constant 1.000000e+00 : f32
    %213 = vector.broadcast %cst_76 : f32 to vector<2x32xf32>
    %214 = arith.addf %213, %212 : vector<2x32xf32>
    %215 = arith.divf %213, %214 : vector<2x32xf32>
    %216 = vector.extract_strided_slice %203 {offsets = [0, 64], sizes = [2, 32], strides = [1, 1]} : vector<2x128xf32> to vector<2x32xf32>
    %217 = math.tanh %216 : vector<2x32xf32>
    %218 = vector.extract_strided_slice %203 {offsets = [0, 96], sizes = [2, 32], strides = [1, 1]} : vector<2x128xf32> to vector<2x32xf32>
    %219 = arith.negf %218 : vector<2x32xf32>
    %220 = math.exp %219 : vector<2x32xf32>
    %cst_77 = arith.constant 1.000000e+00 : f32
    %221 = vector.broadcast %cst_77 : f32 to vector<2x32xf32>
    %222 = arith.addf %221, %220 : vector<2x32xf32>
    %223 = arith.divf %221, %222 : vector<2x32xf32>
    %224 = arith.mulf %215, %198 : vector<2x32xf32>
    %225 = arith.mulf %209, %217 : vector<2x32xf32>
    %226 = arith.addf %224, %225 : vector<2x32xf32>
    %227 = math.tanh %226 : vector<2x32xf32>
    %228 = arith.mulf %223, %227 : vector<2x32xf32>
    %229 = vector.extract_strided_slice %57 {offsets = [12, 0], sizes = [2, 128], strides = [1, 1]} : vector<16x128xf32> to vector<2x128xf32>
    %cst_78 = arith.constant dense<0.000000e+00> : vector<2x128xf32>
    %230 = tpu.matmul %228, %58, %cst_78 {dimension_numbers = #tpu.dot_dimension_numbers<[1], [0], [0], [1], [0, 0, 1, 1], [], []>} : vector<2x32xf32>, vector<32x128xf32>, vector<2x128xf32> -> vector<2x128xf32>
    %231 = arith.addf %229, %230 : vector<2x128xf32>
    %232 = vector.extract_strided_slice %231 {offsets = [0, 0], sizes = [2, 32], strides = [1, 1]} : vector<2x128xf32> to vector<2x32xf32>
    %233 = arith.negf %232 : vector<2x32xf32>
    %234 = math.exp %233 : vector<2x32xf32>
    %cst_79 = arith.constant 1.000000e+00 : f32
    %235 = vector.broadcast %cst_79 : f32 to vector<2x32xf32>
    %236 = arith.addf %235, %234 : vector<2x32xf32>
    %237 = arith.divf %235, %236 : vector<2x32xf32>
    %238 = vector.extract_strided_slice %231 {offsets = [0, 32], sizes = [2, 32], strides = [1, 1]} : vector<2x128xf32> to vector<2x32xf32>
    %239 = arith.negf %238 : vector<2x32xf32>
    %240 = math.exp %239 : vector<2x32xf32>
    %cst_80 = arith.constant 1.000000e+00 : f32
    %241 = vector.broadcast %cst_80 : f32 to vector<2x32xf32>
    %242 = arith.addf %241, %240 : vector<2x32xf32>
    %243 = arith.divf %241, %242 : vector<2x32xf32>
    %244 = vector.extract_strided_slice %231 {offsets = [0, 64], sizes = [2, 32], strides = [1, 1]} : vector<2x128xf32> to vector<2x32xf32>
    %245 = math.tanh %244 : vector<2x32xf32>
    %246 = vector.extract_strided_slice %231 {offsets = [0, 96], sizes = [2, 32], strides = [1, 1]} : vector<2x128xf32> to vector<2x32xf32>
    %247 = arith.negf %246 : vector<2x32xf32>
    %248 = math.exp %247 : vector<2x32xf32>
    %cst_81 = arith.constant 1.000000e+00 : f32
    %249 = vector.broadcast %cst_81 : f32 to vector<2x32xf32>
    %250 = arith.addf %249, %248 : vector<2x32xf32>
    %251 = arith.divf %249, %250 : vector<2x32xf32>
    %252 = arith.mulf %243, %226 : vector<2x32xf32>
    %253 = arith.mulf %237, %245 : vector<2x32xf32>
    %254 = arith.addf %252, %253 : vector<2x32xf32>
    %255 = math.tanh %254 : vector<2x32xf32>
    %256 = arith.mulf %251, %255 : vector<2x32xf32>
    %257 = vector.extract_strided_slice %57 {offsets = [14, 0], sizes = [2, 128], strides = [1, 1]} : vector<16x128xf32> to vector<2x128xf32>
    %cst_82 = arith.constant dense<0.000000e+00> : vector<2x128xf32>
    %258 = tpu.matmul %256, %58, %cst_82 {dimension_numbers = #tpu.dot_dimension_numbers<[1], [0], [0], [1], [0, 0, 1, 1], [], []>} : vector<2x32xf32>, vector<32x128xf32>, vector<2x128xf32> -> vector<2x128xf32>
    %259 = arith.addf %257, %258 : vector<2x128xf32>
    %260 = vector.extract_strided_slice %259 {offsets = [0, 0], sizes = [2, 32], strides = [1, 1]} : vector<2x128xf32> to vector<2x32xf32>
    %261 = arith.negf %260 : vector<2x32xf32>
    %262 = math.exp %261 : vector<2x32xf32>
    %cst_83 = arith.constant 1.000000e+00 : f32
    %263 = vector.broadcast %cst_83 : f32 to vector<2x32xf32>
    %264 = arith.addf %263, %262 : vector<2x32xf32>
    %265 = arith.divf %263, %264 : vector<2x32xf32>
    %266 = vector.extract_strided_slice %259 {offsets = [0, 32], sizes = [2, 32], strides = [1, 1]} : vector<2x128xf32> to vector<2x32xf32>
    %267 = arith.negf %266 : vector<2x32xf32>
    %268 = math.exp %267 : vector<2x32xf32>
    %cst_84 = arith.constant 1.000000e+00 : f32
    %269 = vector.broadcast %cst_84 : f32 to vector<2x32xf32>
    %270 = arith.addf %269, %268 : vector<2x32xf32>
    %271 = arith.divf %269, %270 : vector<2x32xf32>
    %272 = vector.extract_strided_slice %259 {offsets = [0, 64], sizes = [2, 32], strides = [1, 1]} : vector<2x128xf32> to vector<2x32xf32>
    %273 = math.tanh %272 : vector<2x32xf32>
    %274 = vector.extract_strided_slice %259 {offsets = [0, 96], sizes = [2, 32], strides = [1, 1]} : vector<2x128xf32> to vector<2x32xf32>
    %275 = arith.negf %274 : vector<2x32xf32>
    %276 = math.exp %275 : vector<2x32xf32>
    %cst_85 = arith.constant 1.000000e+00 : f32
    %277 = vector.broadcast %cst_85 : f32 to vector<2x32xf32>
    %278 = arith.addf %277, %276 : vector<2x32xf32>
    %279 = arith.divf %277, %278 : vector<2x32xf32>
    %280 = arith.mulf %271, %254 : vector<2x32xf32>
    %281 = arith.mulf %265, %273 : vector<2x32xf32>
    %282 = arith.addf %280, %281 : vector<2x32xf32>
    %283 = math.tanh %282 : vector<2x32xf32>
    %284 = arith.mulf %279, %283 : vector<2x32xf32>
    %c0_86 = arith.constant 0 : index
    %c0_87 = arith.constant 0 : index
    %285 = vector.load %arg9[%c0_86, %c0_87] : memref<32x8xf32, #tpu.memory_space<vmem>>, vector<32x8xf32>
    %cst_88 = arith.constant dense<0.000000e+00> : vector<2x8xf32>
    %286 = tpu.matmul %284, %285, %cst_88 {dimension_numbers = #tpu.dot_dimension_numbers<[1], [0], [0], [1], [0, 0, 1, 1], [], []>} : vector<2x32xf32>, vector<32x8xf32>, vector<2x8xf32> -> vector<2x8xf32>
    %c0_89 = arith.constant 0 : index
    %c0_90 = arith.constant 0 : index
    %287 = vector.load %arg10[%c0_89, %c0_90] : memref<1x8xf32, #tpu.memory_space<vmem>>, vector<1x8xf32>
    %288 = vector.broadcast %287 : vector<1x8xf32> to vector<2x8xf32>
    %289 = arith.addf %286, %288 : vector<2x8xf32>
    %c0_91 = arith.constant 0 : index
    %c0_92 = arith.constant 0 : index
    %290 = vector.load %arg11[%c0_91, %c0_92] : memref<2x8xf32, #tpu.memory_space<vmem>>, vector<2x8xf32>
    tpu.vector_store %arg11[%c0_91, %c0_92], %289 {strides = array<i32>} : memref<2x8xf32, #tpu.memory_space<vmem>>, vector<2x8xf32>,
    return
  }
}

</mosaic_0001>

<bundles_post_ra>
// kernel: temporal_graph_network_forward.1
= control target key start
LH: loop header
LB: loop body
LE: loop exit
PB: predicated region body
PF: predicated region fallthrough
CT: control target
= control target key end

     0   :  { %16 = vsyncpa [#allocation3], 0  ;;  %s2716_s0 = inlined_call_operand.vmem [shape: f32[128,4], index: 0, kind: input, shape index: {}]   ;;  %s2717_s1 = inlined_call_operand.vmem [shape: f32[128,128], index: 1, kind: input, shape index: {}]   ;;  %s2718_s2 = inlined_call_operand.vmem [shape: f32[16,128], index: 2, kind: input, shape index: {}]   ;;  %s2719_s3 = inlined_call_operand.hbm [shape: f32[4,32], index: 3, kind: input, shape index: {}]   ;;  %s2720_s4 = inlined_call_operand.hbm [shape: f32[4,32,32], index: 4, kind: input, shape index: {}]   ;;  %s2721_s5 = inlined_call_operand.hbm [shape: f32[5,1,32], index: 5, kind: input, shape index: {}]   ;;  %s2722_s6 = inlined_call_operand.vmem [shape: f32[32,128], index: 6, kind: input, shape index: {}]   ;;  %s2723_s7 = inlined_call_operand.hbm [shape: f32[32,128], index: 7, kind: input, shape index: {}]   ;;  %s2724_s8 = inlined_call_operand.vmem [shape: f32[1,128], index: 8, kind: input, shape index: {}]   ;;  %s2725_s9 = inlined_call_operand.vmem [shape: f32[32,8], index: 9, kind: input, shape index: {}]   ;;  %s2726_s10 = inlined_call_operand.vmem [shape: f32[1,8], index: 10, kind: input, shape index: {}]   ;;  %s2727_s11 = inlined_call_operand.hbm [shape: f32[2,8], index: 11, kind: output, shape index: {}]  }
   0x1   :  { %17 = vsyncpa [#allocation6], 0 }
   0x2   :  { %18 = vsyncpa [#allocation9], 0  ;;  %s41_s19 = sshll.u32 %s2720_s4, 4  ;;  %s42_s19 = int_to_ptr.hbm [resolvable:$true] %s41_s19 }
   0x3   :  { %19 = vsyncpa [#allocation4], 0  ;;  %s2161_s20 = smov [#allocation5]   ;;  %s31_s24 = sshll.u32 %s2719_s3, 4  ;;  %s32_s24 = int_to_ptr.hbm [resolvable:$true] %s31_s24 }
   0x4   :  { %s43_s21 = sshll.u32 %s2161_s20, 4  ;;  %s2162_s25 = smov 128   ;;  %s44_s21 = int_to_ptr.vmem [resolvable:$true] %s43_s21 }
   0x5   :  { %s2163_s26 = smov 8   ;;  %s2164_s27 = smov [#allocation2]  }
   0x6   :  { %49 = dma.hbm_to_vmem [thread:$0]  %s42_s19, 2048, %s44_s21, [#allocation6], %s2162_s25, %s2162_s25, %s2163_s26  }
   0x7   :  { %s33_s28 = sshll.u32 %s2164_s27, 4  ;;  %s54_s12 = sshll.u32 %s2721_s5, 4  ;;  %s34_s28 = int_to_ptr.vmem [resolvable:$true] %s33_s28  ;;  %s55_s12 = int_to_ptr.hbm [resolvable:$true] %s54_s12 }
   0x8   :  { %36 = dma.hbm_to_vmem [thread:$0]  %s32_s24, 64, %s34_s28, [#allocation3]  }
   0x9   :  { %s2165_s4 = smov [#allocation7]   ;;  %s69_s3 = sshll.u32 %s2723_s7, 4  ;;  %s70_s3 = int_to_ptr.hbm [resolvable:$true] %s69_s3 }
   0xa   :  { %s56_s13 = sshll.u32 %s2165_s4, 4  ;;  %s2166_s16 = smov 16   ;;  %s57_s13 = int_to_ptr.vmem [resolvable:$true] %s56_s13 }
   0xb   :  { %s2167_s17 = smov 1   ;;  %s2168_s18 = smov [#allocation8]  }
   0xc   :  { %62 = dma.hbm_to_vmem [thread:$0]  %s55_s12, 80, %s57_s13, [#allocation6], %s2166_s16, %s2166_s16, %s2167_s17  }
   0xd   :  { %s71_s19 = sshll.u32 %s2168_s18, 4  ;;  %s72_s19 = int_to_ptr.vmem [resolvable:$true] %s71_s19 }
   0xe   :  { %77 = dma.hbm_to_vmem [thread:$0]  %s70_s3, 512, %s72_s19, [#allocation9], %s2162_s25, %s2162_s25, %s2163_s26  }
   0xf   :  { %2153 = dma.done.wait [#allocation3], 64  }
  0x10   :  { %2154 = vsyncadd [#allocation3], 4294967232 }
  0x11   :  { %2155 = dma.done.wait [#allocation6], 2128  }
  0x12   :  { %2156 = vsyncadd [#allocation6], 4294965168 }
  0x13   :  { %2157 = dma.done.wait [#allocation9], 512  }
  0x14   :  { %2158 = vsyncadd [#allocation9], 4294966784  ;;  %vm182_vm0 = vcmask 1043456   ;;  %vm133_vm1 = vcmask 31744   ;;  %v132_v0 = vld [vmem:[#allocation2] sm:$0xf] }
  0x15   :  { %v116_v1 = vld [vmem:[%s2716_s0] sm:$0xff]  ;;  %1819 = vmatpush.msk.msra.mxu0 %vm182_vm0, %v132_v0  ;;  %1918 = vmatpush.msk.msra.mxu1 %vm182_vm0, %v132_v0  ;;  %v117_v3 = vld [vmem:[%s2716_s0 + $0x8] sm:$0xff]  ;;  %v118_v5 = vld [vmem:[%s2716_s0 + $0x10] sm:$0xff]  ;;  %vm340_vm2 = vcmask 261120   ;;  %s2170_s7 = smov 64   ;;  %s2172_s30 = smov [#allocation10]  }
  0x16   :  { %v128_v2 = vld [vmem:[%s2716_s0 + $0x60] sm:$0xff]  ;;  %1820 = vmatmul.msk.f32.vlgmr.msra.gmra.mxu0 %vm133_vm1, %v116_v1  ;;  %v129_v4 = vld [vmem:[%s2716_s0 + $0x68] sm:$0xff]  ;;  %v130_v6 = vld [vmem:[%s2716_s0 + $0x70] sm:$0xff]  ;;  %s1805_s12 = sshll.u32 %s2172_s30, 4  ;;  %s1806_s12 = int_to_ptr.vmem [resolvable:$true] %s1805_s12 }
  0x17   :  { %1832 = vmatmul.msk.f32.vlgmr.msra.gmra.mxu1 %vm133_vm1, %v128_v2  ;;  %v119_v7 = vld [vmem:[%s2716_s0 + $0x18] sm:$0xff]  ;;  %v120_v9 = vld [vmem:[%s2716_s0 + $0x20] sm:$0xff]  ;;  %v121_v10 = vld [vmem:[%s2716_s0 + $0x28] sm:$0xff] }
  0x18   :  { %v131_v8 = vld [vmem:[%s2716_s0 + $0x78] sm:$0xff]  ;;  %v122_v11 = vld [vmem:[%s2716_s0 + $0x30] sm:$0xff]  ;;  %v124_v13 = vld [vmem:[%s2716_s0 + $0x40] sm:$0xff] }
  0x19   :  { %v123_v12 = vld [vmem:[%s2716_s0 + $0x38] sm:$0xff]  ;;  %v125_v14 = vld [vmem:[%s2716_s0 + $0x48] sm:$0xff]  ;;  %v126_v15 = vld [vmem:[%s2716_s0 + $0x50] sm:$0xff] }
  0x1a   :  { %v127_v16 = vld [vmem:[%s2716_s0 + $0x58] sm:$0xff]  ;;  %v2312_v33 = vld [vmem:[%s2717_s1] sm:$0xff]  ;;  %v2318_v34 = vld [vmem:[%s2717_s1 + $0x8] sm:$0xff] }
  0x1b   :  { %v2324_v35 = vld [vmem:[%s2717_s1 + $0x10] sm:$0xff]  ;;  %v2330_v36 = vld [vmem:[%s2717_s1 + $0x18] sm:$0xff]  ;;  %v2336_v37 = vld [vmem:[%s2717_s1 + $0x20] sm:$0xff] }
  0x1c   :  { %v2342_v38 = vld [vmem:[%s2717_s1 + $0x28] sm:$0xff]  ;;  %v2348_v39 = vld [vmem:[%s2717_s1 + $0x30] sm:$0xff]  ;;  %v2354_v40 = vld [vmem:[%s2717_s1 + $0x38] sm:$0xff] }
  0x1d   :  { %v2360_v41 = vld [vmem:[%s2717_s1 + $0x40] sm:$0xff]  ;;  %v2366_v42 = vld [vmem:[%s2717_s1 + $0x48] sm:$0xff]  ;;  %v2372_v43 = vld [vmem:[%s2717_s1 + $0x50] sm:$0xff] }
  0x1e   :  { %1821 = vmatmul.msk.f32.gmra.mxu0 %vm133_vm1, %v117_v3  ;;  %v2378_v44 = vld [vmem:[%s2717_s1 + $0x58] sm:$0xff]  ;;  %v2384_v47 = vld [vmem:[%s2717_s1 + $0x60] sm:$0xff]  ;;  %v337_v48 = vld [vmem:[#allocation5 + $0x8] sm:$0xff] }
  0x1f   :  { %1833 = vmatmul.msk.f32.gmra.mxu1 %vm133_vm1, %v129_v4  ;;  %v339_v45 = vld [vmem:[#allocation5 + $0x18] sm:$0xff]  ;;  %v338_v46 = vld [vmem:[#allocation5 + $0x10] sm:$0xff]  ;;  %v336_v49 = vld [vmem:[#allocation5] sm:$0xff] }
  0x20   :  { %401 = vmatpush.msra.mxu2 %v339_v45  ;;  %1919 = vmatpush.msra.mxu3 %v339_v45  ;;  %v2390_v50 = vld [vmem:[%s2717_s1 + $0x68] sm:$0xff]  ;;  %v2396_v51 = vld [vmem:[%s2717_s1 + $0x70] sm:$0xff]  ;;  %v2402_v52 = vld [vmem:[%s2717_s1 + $0x78] sm:$0xff] }
  0x21   :  { %v2405_v53 = vld [vmem:[#allocation7] ss:$0 sm:$0xff] }
  0x22   :  { %402 = vmatpush.msra.mxu2 %v338_v46  ;;  %1920 = vmatpush.msra.mxu3 %v338_v46 }
  0x24   :  { %403 = vmatpush.msra.mxu2 %v337_v48  ;;  %1921 = vmatpush.msra.mxu3 %v337_v48 }
  0x26   :  { %1822 = vmatmul.msk.f32.gmra.mxu0 %vm133_vm1, %v118_v5  ;;  %404 = vmatpush.msra.mxu2 %v336_v49 }
  0x27   :  { %1834 = vmatmul.msk.f32.gmra.mxu1 %vm133_vm1, %v130_v6  ;;  %1922 = vmatpush.msra.mxu3 %v336_v49 }
  0x2e   :  { %1823 = vmatmul.msk.f32.gmra.mxu0 %vm133_vm1, %v119_v7 }
  0x2f   :  { %1835 = vmatmul.msk.f32.gmra.mxu1 %vm133_vm1, %v131_v8 }
  0x36   :  { %1824 = vmatmul.msk.f32.gmra.mxu0 %vm133_vm1, %v120_v9 }
  0x3e   :  { %1825 = vmatmul.msk.f32.gmra.mxu0 %vm133_vm1, %v121_v10 }
  0x46   :  { %1826 = vmatmul.msk.f32.gmra.mxu0 %vm133_vm1, %v122_v11 }
  0x4e   :  { %1827 = vmatmul.msk.f32.gmra.mxu0 %vm133_vm1, %v123_v12 }
  0x56   :  { %1828 = vmatmul.msk.f32.gmra.mxu0 %vm133_vm1, %v124_v13 }
  0x5e   :  { %1829 = vmatmul.msk.f32.gmra.mxu0 %vm133_vm1, %v125_v14 }
  0x66   :  { %1830 = vmatmul.msk.f32.gmra.mxu0 %vm133_vm1, %v126_v15 }
  0x6e   :  { %1831 = vmatmul.msk.f32.gmra.mxu0 %vm133_vm1, %v127_v16 }
  0x93   :  { %v203_v17 = vpop.f32.mrf.mxu0 }
  0x94   :  { %v239_v18 = vpop.f32.mrf.mxu1 }
  0x9b   :  { %v206_v19 = vpop.f32.mrf.mxu0 }
  0x9c   :  { %v242_v20 = vpop.f32.mrf.mxu1 }
  0xa3   :  { %v209_v21 = vpop.f32.mrf.mxu0 }
  0xa4   :  { %v245_v22 = vpop.f32.mrf.mxu1 }
  0xab   :  { %v212_v23 = vpop.f32.mrf.mxu0 }
  0xac   :  { %v248_v24 = vpop.f32.mrf.mxu1 }
  0xad   :  { %255 = vmatpush.msrb.mxu1 %v248_v24 }
  0xaf   :  { %256 = vmatpush.msrb.mxu1 %v245_v22 }
  0xb1   :  { %257 = vmatpush.msrb.mxu1 %v242_v20 }
  0xb3   :  { %258 = vmatpush.msrb.mxu1 %v239_v18  ;;  %v215_v25 = vpop.f32.mrf.mxu0 }
  0xbb   :  { %v218_v26 = vpop.f32.mrf.mxu0 }
  0xc3   :  { %v221_v27 = vpop.f32.mrf.mxu0 }
  0xcb   :  { %v224_v28 = vpop.f32.mrf.mxu0 }
  0xd3   :  { %v227_v29 = vpop.f32.mrf.mxu0 }
  0xdb   :  { %v230_v30 = vpop.f32.mrf.mxu0 }
  0xe3   :  { %v233_v31 = vpop.f32.mrf.mxu0 }
  0xeb   :  { %v236_v32 = vpop.f32.mrf.mxu0 }
  0xec   :  { %259 = vmatpush.msrb.mxu1 %v236_v32 }
  0xee   :  { %260 = vmatpush.msrb.mxu1 %v233_v31 }
  0xf0   :  { %261 = vmatpush.msrb.mxu1 %v230_v30 }
  0xf2   :  { %262 = vmatpush.msrb.mxu1 %v227_v29 }
  0xf4   :  { %263 = vmatpush.msrb.mxu1 %v224_v28 }
  0xf6   :  { %264 = vmatpush.msrb.mxu1 %v221_v27 }
  0xf8   :  { %265 = vmatpush.msrb.mxu1 %v218_v26 }
  0xfa   :  { %266 = vmatpush.msrb.mxu1 %v215_v25 }
  0xfc   :  { %267 = vmatpush.msrb.mxu1 %v212_v23 }
  0xfe   :  { %268 = vmatpush.msrb.mxu1 %v209_v21 }
 0x100   :  { %269 = vmatpush.msrb.mxu1 %v206_v19 }
 0x102   :  { %270 = vmatpush.msrb.mxu1 %v203_v17 }
 0x103   :  { %271 = vmatmul.f32.vlgmr.msrb.gmra.mxu1 %v2312_v33 }
 0x10b   :  { %274 = vmatmul.f32.gmra.mxu1 %v2318_v34 }
 0x113   :  { %277 = vmatmul.f32.gmra.mxu1 %v2324_v35 }
 0x11b   :  { %280 = vmatmul.f32.gmra.mxu1 %v2330_v36 }
 0x123   :  { %283 = vmatmul.f32.gmra.mxu1 %v2336_v37 }
 0x12b   :  { %286 = vmatmul.f32.gmra.mxu1 %v2342_v38 }
 0x133   :  { %289 = vmatmul.f32.gmra.mxu1 %v2348_v39 }
 0x13b   :  { %292 = vmatmul.f32.gmra.mxu1 %v2354_v40 }
 0x143   :  { %295 = vmatmul.f32.gmra.mxu1 %v2360_v41 }
 0x14b   :  { %298 = vmatmul.f32.gmra.mxu1 %v2366_v42 }
 0x153   :  { %301 = vmatmul.f32.gmra.mxu1 %v2372_v43 }
 0x15b   :  { %304 = vmatmul.f32.gmra.mxu1 %v2378_v44 }
 0x163   :  { %307 = vmatmul.f32.gmra.mxu1 %v2384_v47 }
 0x16b   :  { %310 = vmatmul.f32.gmra.mxu1 %v2390_v50 }
 0x173   :  { %313 = vmatmul.f32.gmra.mxu1 %v2396_v51 }
 0x17b   :  { %316 = vmatmul.f32.gmra.mxu1 %v2402_v52 }
 0x180   :  { %v272_v54 = vpop.f32.mrf.mxu1 }
 0x181   :  { %v273_v55 = vadd.f32 %v2405_v53, %v272_v54 }
 0x183   :  { %v320_v56 = vmax.f32 %v273_v55, 0.0 }
 0x185   :  { %1836 = vmatmul.msk.f32.vlgmr.msra.gmra.mxu2 %vm340_vm2, %v320_v56 }
 0x188   :  { %v275_v57 = vpop.f32.mrf.mxu1 }
 0x189   :  { %v276_v58 = vadd.f32 %v2405_v53, %v275_v57 }
 0x18b   :  { %v321_v59 = vmax.f32 %v276_v58, 0.0 }
 0x18d   :  { %1837 = vmatmul.msk.f32.gmra.mxu2 %vm340_vm2, %v321_v59 }
 0x190   :  { %v278_v60 = vpop.f32.mrf.mxu1 }
 0x191   :  { %v279_v61 = vadd.f32 %v2405_v53, %v278_v60 }
 0x193   :  { %v322_v62 = vmax.f32 %v279_v61, 0.0 }
 0x195   :  { %1838 = vmatmul.msk.f32.gmra.mxu2 %vm340_vm2, %v322_v62 }
 0x198   :  { %v281_v63 = vpop.f32.mrf.mxu1 }
 0x199   :  { %v282_v0 = vadd.f32 %v2405_v53, %v281_v63 }
 0x19b   :  { %v323_v1 = vmax.f32 %v282_v0, 0.0 }
 0x19d   :  { %1839 = vmatmul.msk.f32.gmra.mxu2 %vm340_vm2, %v323_v1 }
 0x1a0   :  { %v284_v2 = vpop.f32.mrf.mxu1 }
 0x1a1   :  { %v285_v3 = vadd.f32 %v2405_v53, %v284_v2 }
 0x1a3   :  { %v324_v4 = vmax.f32 %v285_v3, 0.0 }
 0x1a5   :  { %1840 = vmatmul.msk.f32.gmra.mxu2 %vm340_vm2, %v324_v4 }
 0x1a8   :  { %v287_v5 = vpop.f32.mrf.mxu1 }
 0x1a9   :  { %v288_v6 = vadd.f32 %v2405_v53, %v287_v5 }
 0x1ab   :  { %v325_v7 = vmax.f32 %v288_v6, 0.0  ;;  %v544_v6 = vld [vmem:[#allocation5 + $0x38] sm:$0xff] }
 0x1ac   :  { %605 = vmatpush.msrb.mxu0 %v544_v6 }
 0x1ad   :  { %1841 = vmatmul.msk.f32.gmra.mxu2 %vm340_vm2, %v325_v7  ;;  %v543_v7 = vld [vmem:[#allocation5 + $0x30] sm:$0xff] }
 0x1ae   :  { %606 = vmatpush.msrb.mxu0 %v543_v7 }
 0x1b0   :  { %v290_v8 = vpop.f32.mrf.mxu1 }
 0x1b1   :  { %v291_v9 = vadd.f32 %v2405_v53, %v290_v8  ;;  %v542_v8 = vld [vmem:[#allocation5 + $0x28] sm:$0xff] }
 0x1b2   :  { %607 = vmatpush.msrb.mxu0 %v542_v8 }
 0x1b3   :  { %v326_v10 = vmax.f32 %v291_v9, 0.0  ;;  %v541_v9 = vld [vmem:[#allocation5 + $0x20] sm:$0xff] }
 0x1b4   :  { %608 = vmatpush.msrb.mxu0 %v541_v9 }
 0x1b5   :  { %1842 = vmatmul.msk.f32.gmra.mxu2 %vm340_vm2, %v326_v10  ;;  %v1952_v10 = vld [vmem:[#allocation7 + $0x1] ss:$0 sm:$0xff] }
 0x1b8   :  { %v293_v11 = vpop.f32.mrf.mxu1 }
 0x1b9   :  { %v294_v12 = vadd.f32 %v2405_v53, %v293_v11 }
 0x1bb   :  { %v327_v13 = vmax.f32 %v294_v12, 0.0 }
 0x1bd   :  { %1843 = vmatmul.msk.f32.gmra.mxu2 %vm340_vm2, %v327_v13 }
 0x1c0   :  { %v296_v14 = vpop.f32.mrf.mxu1 }
 0x1c1   :  { %v297_v15 = vadd.f32 %v2405_v53, %v296_v14 }
 0x1c3   :  { %v328_v16 = vmax.f32 %v297_v15, 0.0 }
 0x1c5   :  { %1844 = vmatmul.msk.f32.gmra.mxu2 %vm340_vm2, %v328_v16 }
 0x1c8   :  { %v299_v17 = vpop.f32.mrf.mxu1 }
 0x1c9   :  { %v300_v18 = vadd.f32 %v2405_v53, %v299_v17 }
 0x1cb   :  { %v329_v19 = vmax.f32 %v300_v18, 0.0 }
 0x1cd   :  { %1845 = vmatmul.msk.f32.gmra.mxu2 %vm340_vm2, %v329_v19 }
 0x1d0   :  { %v302_v20 = vpop.f32.mrf.mxu1 }
 0x1d1   :  { %v303_v21 = vadd.f32 %v2405_v53, %v302_v20 }
 0x1d3   :  { %v330_v22 = vmax.f32 %v303_v21, 0.0 }
 0x1d5   :  { %1846 = vmatmul.msk.f32.gmra.mxu2 %vm340_vm2, %v330_v22 }
 0x1d8   :  { %v305_v23 = vpop.f32.mrf.mxu1 }
 0x1d9   :  { %v306_v24 = vadd.f32 %v2405_v53, %v305_v23 }
 0x1db   :  { %v331_v25 = vmax.f32 %v306_v24, 0.0 }
 0x1dd   :  { %1847 = vmatmul.msk.f32.gmra.mxu2 %vm340_vm2, %v331_v25 }
 0x1e0   :  { %v308_v26 = vpop.f32.mrf.mxu1 }
 0x1e1   :  { %v309_v27 = vadd.f32 %v2405_v53, %v308_v26 }
 0x1e3   :  { %v332_v28 = vmax.f32 %v309_v27, 0.0 }
 0x1e5   :  { %1848 = vmatmul.msk.f32.vlgmr.msra.gmra.mxu3 %vm340_vm2, %v332_v28 }
 0x1e8   :  { %v311_v29 = vpop.f32.mrf.mxu1 }
 0x1e9   :  { %v312_v30 = vadd.f32 %v2405_v53, %v311_v29 }
 0x1eb   :  { %v333_v31 = vmax.f32 %v312_v30, 0.0 }
 0x1ed   :  { %1849 = vmatmul.msk.f32.gmra.mxu3 %vm340_vm2, %v333_v31 }
 0x1f0   :  { %v314_v32 = vpop.f32.mrf.mxu1 }
 0x1f1   :  { %v315_v45 = vadd.f32 %v2405_v53, %v314_v32 }
 0x1f3   :  { %v334_v46 = vmax.f32 %v315_v45, 0.0 }
 0x1f5   :  { %1850 = vmatmul.msk.f32.gmra.mxu3 %vm340_vm2, %v334_v46 }
 0x1f8   :  { %v317_v48 = vpop.f32.mrf.mxu1 }
 0x1f9   :  { %v318_v49 = vadd.f32 %v2405_v53, %v317_v48 }
 0x1fb   :  { %v335_v54 = vmax.f32 %v318_v49, 0.0 }
 0x1fd   :  { %1851 = vmatmul.msk.f32.gmra.mxu3 %vm340_vm2, %v335_v54 }
 0x208   :  { %v406_v55 = vpop.f32.mrf.mxu2 }
 0x210   :  { %v409_v56 = vpop.f32.mrf.mxu2 }
 0x218   :  { %v412_v57 = vpop.f32.mrf.mxu2 }
 0x220   :  { %v415_v58 = vpop.f32.mrf.mxu2 }
 0x228   :  { %v418_v59 = vpop.f32.mrf.mxu2 }
 0x230   :  { %v421_v60 = vpop.f32.mrf.mxu2 }
 0x238   :  { %v424_v61 = vpop.f32.mrf.mxu2 }
 0x240   :  { %v427_v62 = vpop.f32.mrf.mxu2 }
 0x248   :  { %v430_v0 = vpop.f32.mrf.mxu2 }
 0x250   :  { %v433_v2 = vpop.f32.mrf.mxu2 }
 0x258   :  { %v436_v4 = vpop.f32.mrf.mxu2 }
 0x260   :  { %v439_v53 = vpop.f32.mrf.mxu2 }
 0x268   :  { %v442_v63 = vpop.f32.mrf.mxu3 }
 0x270   :  { %v445_v1 = vpop.f32.mrf.mxu3 }
 0x278   :  { %v448_v3 = vpop.f32.mrf.mxu3 }
 0x280   :  { %v451_v5 = vpop.f32.mrf.mxu3 }
 0x281   :  { %459 = vmatpush.msrb.mxu3 %v451_v5 }
 0x283   :  { %460 = vmatpush.msrb.mxu3 %v448_v3 }
 0x285   :  { %461 = vmatpush.msrb.mxu3 %v445_v1 }
 0x287   :  { %462 = vmatpush.msrb.mxu3 %v442_v63 }
 0x289   :  { %463 = vmatpush.msrb.mxu3 %v439_v53 }
 0x28b   :  { %464 = vmatpush.msrb.mxu3 %v436_v4 }
 0x28d   :  { %465 = vmatpush.msrb.mxu3 %v433_v2 }
 0x28f   :  { %466 = vmatpush.msrb.mxu3 %v430_v0 }
 0x291   :  { %467 = vmatpush.msrb.mxu3 %v427_v62 }
 0x293   :  { %468 = vmatpush.msrb.mxu3 %v424_v61 }
 0x295   :  { %469 = vmatpush.msrb.mxu3 %v421_v60 }
 0x297   :  { %470 = vmatpush.msrb.mxu3 %v418_v59 }
 0x299   :  { %471 = vmatpush.msrb.mxu3 %v415_v58 }
 0x29b   :  { %472 = vmatpush.msrb.mxu3 %v412_v57 }
 0x29d   :  { %473 = vmatpush.msrb.mxu3 %v409_v56 }
 0x29f   :  { %474 = vmatpush.msrb.mxu3 %v406_v55 }
 0x2a0   :  { %475 = vmatmul.f32.vlgmr.msrb.gmra.mxu3 %v2312_v33 }
 0x2a8   :  { %478 = vmatmul.f32.gmra.mxu3 %v2318_v34 }
 0x2b0   :  { %481 = vmatmul.f32.gmra.mxu3 %v2324_v35 }
 0x2b8   :  { %484 = vmatmul.f32.gmra.mxu3 %v2330_v36 }
 0x2c0   :  { %487 = vmatmul.f32.gmra.mxu3 %v2336_v37 }
 0x2c8   :  { %490 = vmatmul.f32.gmra.mxu3 %v2342_v38 }
 0x2d0   :  { %493 = vmatmul.f32.gmra.mxu3 %v2348_v39 }
 0x2d8   :  { %496 = vmatmul.f32.gmra.mxu3 %v2354_v40 }
 0x2e0   :  { %499 = vmatmul.f32.gmra.mxu3 %v2360_v41 }
 0x2e8   :  { %502 = vmatmul.f32.gmra.mxu3 %v2366_v42 }
 0x2f0   :  { %505 = vmatmul.f32.gmra.mxu3 %v2372_v43 }
 0x2f8   :  { %508 = vmatmul.f32.gmra.mxu3 %v2378_v44 }
 0x300   :  { %511 = vmatmul.f32.gmra.mxu3 %v2384_v47 }
 0x308   :  { %514 = vmatmul.f32.gmra.mxu3 %v2390_v50 }
 0x310   :  { %517 = vmatmul.f32.gmra.mxu3 %v2396_v51 }
 0x318   :  { %520 = vmatmul.f32.gmra.mxu3 %v2402_v52 }
 0x323   :  { %v476_v11 = vpop.f32.mrf.mxu3 }
 0x324   :  { %v477_v12 = vadd.f32 %v1952_v10, %v476_v11 }
 0x326   :  { %v524_v13 = vmax.f32 %v477_v12, 0.0 }
 0x328   :  { %1852 = vmatmul.msk.f32.vlgmr.msrb.gmra.mxu0 %vm340_vm2, %v524_v13 }
 0x32b   :  { %v479_v14 = vpop.f32.mrf.mxu3 }
 0x32c   :  { %v480_v15 = vadd.f32 %v1952_v10, %v479_v14 }
 0x32e   :  { %v525_v16 = vmax.f32 %v480_v15, 0.0 }
 0x330   :  { %1853 = vmatmul.msk.f32.gmra.mxu0 %vm340_vm2, %v525_v16 }
 0x333   :  { %v482_v17 = vpop.f32.mrf.mxu3 }
 0x334   :  { %v483_v18 = vadd.f32 %v1952_v10, %v482_v17 }
 0x336   :  { %v526_v19 = vmax.f32 %v483_v18, 0.0 }
 0x338   :  { %1854 = vmatmul.msk.f32.gmra.mxu0 %vm340_vm2, %v526_v19 }
 0x33b   :  { %v485_v20 = vpop.f32.mrf.mxu3 }
 0x33c   :  { %v486_v21 = vadd.f32 %v1952_v10, %v485_v20 }
 0x33e   :  { %v527_v22 = vmax.f32 %v486_v21, 0.0 }
 0x340   :  { %1855 = vmatmul.msk.f32.gmra.mxu0 %vm340_vm2, %v527_v22 }
 0x343   :  { %v488_v23 = vpop.f32.mrf.mxu3 }
 0x344   :  { %v489_v24 = vadd.f32 %v1952_v10, %v488_v23 }
 0x346   :  { %v528_v25 = vmax.f32 %v489_v24, 0.0 }
 0x348   :  { %1856 = vmatmul.msk.f32.gmra.mxu0 %vm340_vm2, %v528_v25 }
 0x34b   :  { %v491_v26 = vpop.f32.mrf.mxu3 }
 0x34c   :  { %v492_v27 = vadd.f32 %v1952_v10, %v491_v26 }
 0x34e   :  { %v529_v28 = vmax.f32 %v492_v27, 0.0 }
 0x350   :  { %1857 = vmatmul.msk.f32.gmra.mxu0 %vm340_vm2, %v529_v28  ;;  %v747_v28 = vld [vmem:[#allocation5 + $0x50] sm:$0xff] }
 0x353   :  { %v494_v29 = vpop.f32.mrf.mxu3 }
 0x354   :  { %v495_v30 = vadd.f32 %v1952_v10, %v494_v29  ;;  %v746_v29 = vld [vmem:[#allocation5 + $0x48] sm:$0xff] }
 0x356   :  { %v530_v31 = vmax.f32 %v495_v30, 0.0  ;;  %v745_v30 = vld [vmem:[#allocation5 + $0x40] sm:$0xff] }
 0x358   :  { %1858 = vmatmul.msk.f32.gmra.mxu0 %vm340_vm2, %v530_v31  ;;  %v1953_v31 = vld [vmem:[#allocation7 + $0x2] ss:$0 sm:$0xff] }
 0x35b   :  { %v497_v32 = vpop.f32.mrf.mxu3 }
 0x35c   :  { %v498_v45 = vadd.f32 %v1952_v10, %v497_v32 }
 0x35e   :  { %v531_v46 = vmax.f32 %v498_v45, 0.0 }
 0x360   :  { %1859 = vmatmul.msk.f32.gmra.mxu0 %vm340_vm2, %v531_v46 }
 0x363   :  { %v500_v48 = vpop.f32.mrf.mxu3 }
 0x364   :  { %v501_v49 = vadd.f32 %v1952_v10, %v500_v48 }
 0x366   :  { %v532_v54 = vmax.f32 %v501_v49, 0.0 }
 0x368   :  { %1860 = vmatmul.msk.f32.gmra.mxu0 %vm340_vm2, %v532_v54 }
 0x36b   :  { %v503_v55 = vpop.f32.mrf.mxu3 }
 0x36c   :  { %v504_v56 = vadd.f32 %v1952_v10, %v503_v55 }
 0x36e   :  { %v533_v57 = vmax.f32 %v504_v56, 0.0 }
 0x370   :  { %1861 = vmatmul.msk.f32.gmra.mxu0 %vm340_vm2, %v533_v57 }
 0x373   :  { %v506_v58 = vpop.f32.mrf.mxu3 }
 0x374   :  { %v507_v59 = vadd.f32 %v1952_v10, %v506_v58 }
 0x376   :  { %v534_v60 = vmax.f32 %v507_v59, 0.0 }
 0x378   :  { %1862 = vmatmul.msk.f32.gmra.mxu0 %vm340_vm2, %v534_v60 }
 0x37b   :  { %v509_v61 = vpop.f32.mrf.mxu3 }
 0x37c   :  { %v510_v62 = vadd.f32 %v1952_v10, %v509_v61 }
 0x37e   :  { %v535_v63 = vmax.f32 %v510_v62, 0.0 }
 0x380   :  { %1863 = vmatmul.msk.f32.gmra.mxu0 %vm340_vm2, %v535_v63 }
 0x383   :  { %v512_v0 = vpop.f32.mrf.mxu3 }
 0x384   :  { %v513_v1 = vadd.f32 %v1952_v10, %v512_v0 }
 0x386   :  { %v536_v2 = vmax.f32 %v513_v1, 0.0 }
 0x388   :  { %1864 = vmatmul.msk.f32.gmra.mxu0 %vm340_vm2, %v536_v2 }
 0x38b   :  { %v515_v3 = vpop.f32.mrf.mxu3 }
 0x38c   :  { %v516_v4 = vadd.f32 %v1952_v10, %v515_v3 }
 0x38e   :  { %v537_v5 = vmax.f32 %v516_v4, 0.0 }
 0x390   :  { %1865 = vmatmul.msk.f32.gmra.mxu0 %vm340_vm2, %v537_v5 }
 0x393   :  { %v518_v53 = vpop.f32.mrf.mxu3 }
 0x394   :  { %v519_v6 = vadd.f32 %v1952_v10, %v518_v53 }
 0x396   :  { %v538_v7 = vmax.f32 %v519_v6, 0.0 }
 0x398   :  { %1866 = vmatmul.msk.f32.gmra.mxu0 %vm340_vm2, %v538_v7 }
 0x39b   :  { %v521_v8 = vpop.f32.mrf.mxu3 }
 0x39c   :  { %v522_v9 = vadd.f32 %v1952_v10, %v521_v8  ;;  %v748_v10 = vld [vmem:[#allocation5 + $0x58] sm:$0xff] }
 0x39d   :  { %809 = vmatpush.msra.mxu1 %v748_v10 }
 0x39e   :  { %v539_v11 = vmax.f32 %v522_v9, 0.0 }
 0x39f   :  { %810 = vmatpush.msra.mxu1 %v747_v28 }
 0x3a0   :  { %1867 = vmatmul.msk.f32.gmra.mxu0 %vm340_vm2, %v539_v11 }
 0x3a1   :  { %811 = vmatpush.msra.mxu1 %v746_v29 }
 0x3a3   :  { %812 = vmatpush.msra.mxu1 %v745_v30 }
 0x3a5   :  { %v610_v12 = vpop.f32.mrf.mxu0 }
 0x3ad   :  { %v613_v13 = vpop.f32.mrf.mxu0 }
 0x3b5   :  { %v616_v14 = vpop.f32.mrf.mxu0 }
 0x3bd   :  { %v619_v15 = vpop.f32.mrf.mxu0 }
 0x3c5   :  { %v622_v16 = vpop.f32.mrf.mxu0 }
 0x3cd   :  { %v625_v17 = vpop.f32.mrf.mxu0 }
 0x3d5   :  { %v628_v18 = vpop.f32.mrf.mxu0 }
 0x3dd   :  { %v631_v19 = vpop.f32.mrf.mxu0 }
 0x3e5   :  { %v634_v20 = vpop.f32.mrf.mxu0 }
 0x3ed   :  { %v637_v21 = vpop.f32.mrf.mxu0 }
 0x3f5   :  { %v640_v22 = vpop.f32.mrf.mxu0 }
 0x3fd   :  { %v643_v23 = vpop.f32.mrf.mxu0 }
 0x405   :  { %v646_v24 = vpop.f32.mrf.mxu0 }
 0x40d   :  { %v649_v25 = vpop.f32.mrf.mxu0 }
 0x415   :  { %v652_v26 = vpop.f32.mrf.mxu0 }
 0x41d   :  { %v655_v27 = vpop.f32.mrf.mxu0 }
 0x41e   :  { %663 = vmatpush.msrb.mxu2 %v655_v27 }
 0x420   :  { %664 = vmatpush.msrb.mxu2 %v652_v26 }
 0x422   :  { %665 = vmatpush.msrb.mxu2 %v649_v25 }
 0x424   :  { %666 = vmatpush.msrb.mxu2 %v646_v24 }
 0x426   :  { %667 = vmatpush.msrb.mxu2 %v643_v23 }
 0x428   :  { %668 = vmatpush.msrb.mxu2 %v640_v22 }
 0x42a   :  { %669 = vmatpush.msrb.mxu2 %v637_v21 }
 0x42c   :  { %670 = vmatpush.msrb.mxu2 %v634_v20 }
 0x42e   :  { %671 = vmatpush.msrb.mxu2 %v631_v19 }
 0x430   :  { %672 = vmatpush.msrb.mxu2 %v628_v18 }
 0x432   :  { %673 = vmatpush.msrb.mxu2 %v625_v17 }
 0x434   :  { %674 = vmatpush.msrb.mxu2 %v622_v16 }
 0x436   :  { %675 = vmatpush.msrb.mxu2 %v619_v15 }
 0x438   :  { %676 = vmatpush.msrb.mxu2 %v616_v14 }
 0x43a   :  { %677 = vmatpush.msrb.mxu2 %v613_v13 }
 0x43c   :  { %678 = vmatpush.msrb.mxu2 %v610_v12 }
 0x43d   :  { %679 = vmatmul.f32.vlgmr.msrb.gmra.mxu2 %v2312_v33 }
 0x445   :  { %682 = vmatmul.f32.gmra.mxu2 %v2318_v34 }
 0x44d   :  { %685 = vmatmul.f32.gmra.mxu2 %v2324_v35 }
 0x455   :  { %688 = vmatmul.f32.gmra.mxu2 %v2330_v36 }
 0x45d   :  { %691 = vmatmul.f32.gmra.mxu2 %v2336_v37 }
 0x465   :  { %694 = vmatmul.f32.gmra.mxu2 %v2342_v38 }
 0x46d   :  { %697 = vmatmul.f32.gmra.mxu2 %v2348_v39 }
 0x475   :  { %700 = vmatmul.f32.gmra.mxu2 %v2354_v40 }
 0x47d   :  { %703 = vmatmul.f32.gmra.mxu2 %v2360_v41 }
 0x485   :  { %706 = vmatmul.f32.gmra.mxu2 %v2366_v42 }
 0x48d   :  { %709 = vmatmul.f32.gmra.mxu2 %v2372_v43 }
 0x495   :  { %712 = vmatmul.f32.gmra.mxu2 %v2378_v44 }
 0x49d   :  { %715 = vmatmul.f32.gmra.mxu2 %v2384_v47 }
 0x4a5   :  { %718 = vmatmul.f32.gmra.mxu2 %v2390_v50 }
 0x4ad   :  { %721 = vmatmul.f32.gmra.mxu2 %v2396_v51 }
 0x4b5   :  { %724 = vmatmul.f32.gmra.mxu2 %v2402_v52 }
 0x4c0   :  { %v680_v32 = vpop.f32.mrf.mxu2 }
 0x4c1   :  { %v681_v45 = vadd.f32 %v1953_v31, %v680_v32 }
 0x4c3   :  { %v728_v46 = vmax.f32 %v681_v45, 0.0 }
 0x4c5   :  { %1868 = vmatmul.msk.f32.vlgmr.msra.gmra.mxu1 %vm340_vm2, %v728_v46 }
 0x4c8   :  { %v683_v48 = vpop.f32.mrf.mxu2 }
 0x4c9   :  { %v684_v49 = vadd.f32 %v1953_v31, %v683_v48 }
 0x4cb   :  { %v729_v54 = vmax.f32 %v684_v49, 0.0 }
 0x4cd   :  { %1869 = vmatmul.msk.f32.gmra.mxu1 %vm340_vm2, %v729_v54 }
 0x4d0   :  { %v686_v55 = vpop.f32.mrf.mxu2 }
 0x4d1   :  { %v687_v56 = vadd.f32 %v1953_v31, %v686_v55 }
 0x4d3   :  { %v730_v57 = vmax.f32 %v687_v56, 0.0 }
 0x4d5   :  { %1870 = vmatmul.msk.f32.gmra.mxu1 %vm340_vm2, %v730_v57 }
 0x4d8   :  { %v689_v58 = vpop.f32.mrf.mxu2 }
 0x4d9   :  { %v690_v59 = vadd.f32 %v1953_v31, %v689_v58 }
 0x4db   :  { %v731_v60 = vmax.f32 %v690_v59, 0.0 }
 0x4dd   :  { %1871 = vmatmul.msk.f32.gmra.mxu1 %vm340_vm2, %v731_v60 }
 0x4e0   :  { %v692_v61 = vpop.f32.mrf.mxu2 }
 0x4e1   :  { %v693_v62 = vadd.f32 %v1953_v31, %v692_v61 }
 0x4e3   :  { %v732_v63 = vmax.f32 %v693_v62, 0.0 }
 0x4e5   :  { %1872 = vmatmul.msk.f32.gmra.mxu1 %vm340_vm2, %v732_v63 }
 0x4e8   :  { %v695_v0 = vpop.f32.mrf.mxu2 }
 0x4e9   :  { %v696_v1 = vadd.f32 %v1953_v31, %v695_v0 }
 0x4eb   :  { %v733_v2 = vmax.f32 %v696_v1, 0.0 }
 0x4ed   :  { %1873 = vmatmul.msk.f32.gmra.mxu1 %vm340_vm2, %v733_v2 }
 0x4f0   :  { %v698_v3 = vpop.f32.mrf.mxu2 }
 0x4f1   :  { %v699_v4 = vadd.f32 %v1953_v31, %v698_v3 }
 0x4f3   :  { %v734_v5 = vmax.f32 %v699_v4, 0.0 }
 0x4f5   :  { %1874 = vmatmul.msk.f32.gmra.mxu1 %vm340_vm2, %v734_v5 }
 0x4f8   :  { %v701_v53 = vpop.f32.mrf.mxu2 }
 0x4f9   :  { %v702_v6 = vadd.f32 %v1953_v31, %v701_v53 }
 0x4fb   :  { %v735_v7 = vmax.f32 %v702_v6, 0.0 }
 0x4fd   :  { %1875 = vmatmul.msk.f32.gmra.mxu1 %vm340_vm2, %v735_v7 }
 0x500   :  { %v704_v8 = vpop.f32.mrf.mxu2 }
 0x501   :  { %v705_v9 = vadd.f32 %v1953_v31, %v704_v8 }
 0x503   :  { %v736_v11 = vmax.f32 %v705_v9, 0.0 }
 0x505   :  { %1876 = vmatmul.msk.f32.gmra.mxu1 %vm340_vm2, %v736_v11 }
 0x508   :  { %v707_v12 = vpop.f32.mrf.mxu2 }
 0x509   :  { %v708_v13 = vadd.f32 %v1953_v31, %v707_v12 }
 0x50b   :  { %v737_v14 = vmax.f32 %v708_v13, 0.0 }
 0x50d   :  { %1877 = vmatmul.msk.f32.gmra.mxu1 %vm340_vm2, %v737_v14 }
 0x510   :  { %v710_v15 = vpop.f32.mrf.mxu2 }
 0x511   :  { %v711_v16 = vadd.f32 %v1953_v31, %v710_v15 }
 0x513   :  { %v738_v17 = vmax.f32 %v711_v16, 0.0 }
 0x515   :  { %1878 = vmatmul.msk.f32.gmra.mxu1 %vm340_vm2, %v738_v17 }
 0x518   :  { %v713_v18 = vpop.f32.mrf.mxu2 }
 0x519   :  { %v714_v19 = vadd.f32 %v1953_v31, %v713_v18 }
 0x51b   :  { %v739_v20 = vmax.f32 %v714_v19, 0.0 }
 0x51d   :  { %1879 = vmatmul.msk.f32.gmra.mxu1 %vm340_vm2, %v739_v20 }
 0x520   :  { %v716_v21 = vpop.f32.mrf.mxu2 }
 0x521   :  { %v717_v22 = vadd.f32 %v1953_v31, %v716_v21 }
 0x523   :  { %v740_v23 = vmax.f32 %v717_v22, 0.0 }
 0x525   :  { %1880 = vmatmul.msk.f32.gmra.mxu1 %vm340_vm2, %v740_v23 }
 0x528   :  { %v719_v24 = vpop.f32.mrf.mxu2 }
 0x529   :  { %v720_v25 = vadd.f32 %v1953_v31, %v719_v24 }
 0x52b   :  { %v741_v26 = vmax.f32 %v720_v25, 0.0 }
 0x52d   :  { %1881 = vmatmul.msk.f32.gmra.mxu1 %vm340_vm2, %v741_v26 }
 0x530   :  { %v722_v27 = vpop.f32.mrf.mxu2 }
 0x531   :  { %v723_v10 = vadd.f32 %v1953_v31, %v722_v27 }
 0x533   :  { %v742_v28 = vmax.f32 %v723_v10, 0.0 }
 0x535   :  { %1882 = vmatmul.msk.f32.gmra.mxu1 %vm340_vm2, %v742_v28 }
 0x538   :  { %v725_v29 = vpop.f32.mrf.mxu2 }
 0x539   :  { %v726_v30 = vadd.f32 %v1953_v31, %v725_v29  ;;  %v952_v31 = vld [vmem:[#allocation5 + $0x78] sm:$0xff] }
 0x53a   :  { %1013 = vmatpush.msra.mxu0 %v952_v31 }
 0x53b   :  { %v743_v32 = vmax.f32 %v726_v30, 0.0 }
 0x53d   :  { %1883 = vmatmul.msk.f32.gmra.mxu1 %vm340_vm2, %v743_v32 }
 0x542   :  { %v814_v45 = vpop.f32.mrf.mxu1 }
 0x54a   :  { %v817_v46 = vpop.f32.mrf.mxu1 }
 0x552   :  { %v820_v48 = vpop.f32.mrf.mxu1 }
 0x55a   :  { %v823_v49 = vpop.f32.mrf.mxu1 }
 0x562   :  { %v826_v54 = vpop.f32.mrf.mxu1 }
 0x56a   :  { %v829_v55 = vpop.f32.mrf.mxu1 }
 0x572   :  { %v832_v56 = vpop.f32.mrf.mxu1 }
 0x57a   :  { %v835_v57 = vpop.f32.mrf.mxu1 }
 0x582   :  { %v838_v58 = vpop.f32.mrf.mxu1 }
 0x58a   :  { %v841_v59 = vpop.f32.mrf.mxu1 }
 0x592   :  { %v844_v60 = vpop.f32.mrf.mxu1 }
 0x59a   :  { %v847_v61 = vpop.f32.mrf.mxu1 }
 0x5a2   :  { %v850_v62 = vpop.f32.mrf.mxu1 }
 0x5aa   :  { %v853_v63 = vpop.f32.mrf.mxu1 }
 0x5b2   :  { %v856_v0 = vpop.f32.mrf.mxu1 }
 0x5ba   :  { %v859_v1 = vpop.f32.mrf.mxu1 }
 0x5bb   :  { %867 = vmatpush.msra.mxu3 %v859_v1 }
 0x5bd   :  { %868 = vmatpush.msra.mxu3 %v856_v0 }
 0x5bf   :  { %869 = vmatpush.msra.mxu3 %v853_v63 }
 0x5c1   :  { %870 = vmatpush.msra.mxu3 %v850_v62 }
 0x5c3   :  { %871 = vmatpush.msra.mxu3 %v847_v61 }
 0x5c5   :  { %872 = vmatpush.msra.mxu3 %v844_v60 }
 0x5c7   :  { %873 = vmatpush.msra.mxu3 %v841_v59 }
 0x5c9   :  { %874 = vmatpush.msra.mxu3 %v838_v58 }
 0x5cb   :  { %875 = vmatpush.msra.mxu3 %v835_v57 }
 0x5cd   :  { %876 = vmatpush.msra.mxu3 %v832_v56 }
 0x5cf   :  { %877 = vmatpush.msra.mxu3 %v829_v55 }
 0x5d1   :  { %878 = vmatpush.msra.mxu3 %v826_v54 }
 0x5d3   :  { %879 = vmatpush.msra.mxu3 %v823_v49 }
 0x5d5   :  { %880 = vmatpush.msra.mxu3 %v820_v48 }
 0x5d7   :  { %881 = vmatpush.msra.mxu3 %v817_v46 }
 0x5d9   :  { %882 = vmatpush.msra.mxu3 %v814_v45 }
 0x5da   :  { %883 = vmatmul.f32.vlgmr.msra.gmra.mxu3 %v2312_v33  ;;  %v951_v33 = vld [vmem:[#allocation5 + $0x70] sm:$0xff] }
 0x5db   :  { %1014 = vmatpush.msra.mxu0 %v951_v33 }
 0x5e2   :  { %886 = vmatmul.f32.gmra.mxu3 %v2318_v34  ;;  %v950_v34 = vld [vmem:[#allocation5 + $0x68] sm:$0xff] }
 0x5e3   :  { %1015 = vmatpush.msra.mxu0 %v950_v34 }
 0x5ea   :  { %889 = vmatmul.f32.gmra.mxu3 %v2324_v35  ;;  %v949_v35 = vld [vmem:[#allocation5 + $0x60] sm:$0xff] }
 0x5eb   :  { %1016 = vmatpush.msra.mxu0 %v949_v35 }
 0x5f2   :  { %892 = vmatmul.f32.gmra.mxu3 %v2330_v36  ;;  %v1954_v36 = vld [vmem:[#allocation7 + $0x3] ss:$0 sm:$0xff] }
 0x5fa   :  { %895 = vmatmul.f32.gmra.mxu3 %v2336_v37 }
 0x602   :  { %898 = vmatmul.f32.gmra.mxu3 %v2342_v38 }
 0x60a   :  { %901 = vmatmul.f32.gmra.mxu3 %v2348_v39 }
 0x612   :  { %904 = vmatmul.f32.gmra.mxu3 %v2354_v40 }
 0x61a   :  { %907 = vmatmul.f32.gmra.mxu3 %v2360_v41 }
 0x622   :  { %910 = vmatmul.f32.gmra.mxu3 %v2366_v42 }
 0x62a   :  { %913 = vmatmul.f32.gmra.mxu3 %v2372_v43 }
 0x632   :  { %916 = vmatmul.f32.gmra.mxu3 %v2378_v44 }
 0x63a   :  { %919 = vmatmul.f32.gmra.mxu3 %v2384_v47 }
 0x642   :  { %922 = vmatmul.f32.gmra.mxu3 %v2390_v50 }
 0x64a   :  { %925 = vmatmul.f32.gmra.mxu3 %v2396_v51 }
 0x652   :  { %928 = vmatmul.f32.gmra.mxu3 %v2402_v52 }
 0x65d   :  { %v884_v37 = vpop.f32.mrf.mxu3 }
 0x65e   :  { %v885_v38 = vadd.f32 %v1954_v36, %v884_v37 }
 0x660   :  { %v932_v39 = vmax.f32 %v885_v38, 0.0 }
 0x662   :  { %1884 = vmatmul.msk.f32.vlgmr.msra.gmra.mxu0 %vm340_vm2, %v932_v39 }
 0x665   :  { %v887_v40 = vpop.f32.mrf.mxu3 }
 0x666   :  { %v888_v41 = vadd.f32 %v1954_v36, %v887_v40 }
 0x668   :  { %v933_v42 = vmax.f32 %v888_v41, 0.0 }
 0x66a   :  { %1885 = vmatmul.msk.f32.gmra.mxu0 %vm340_vm2, %v933_v42 }
 0x66d   :  { %v890_v43 = vpop.f32.mrf.mxu3 }
 0x66e   :  { %v891_v2 = vadd.f32 %v1954_v36, %v890_v43  ;;  %v2023_v43 = vld [vmem:[%s2717_s1 + $0x8] sm:$0xff] }
 0x670   :  { %v934_v3 = vmax.f32 %v891_v2, 0.0  ;;  %v2024_v2 = vld [vmem:[%s2717_s1 + $0x10] sm:$0xff] }
 0x672   :  { %1886 = vmatmul.msk.f32.gmra.mxu0 %vm340_vm2, %v934_v3  ;;  %v2025_v3 = vld [vmem:[%s2717_s1 + $0x18] sm:$0xff] }
 0x675   :  { %v893_v4 = vpop.f32.mrf.mxu3 }
 0x676   :  { %v894_v5 = vadd.f32 %v1954_v36, %v893_v4  ;;  %v2026_v4 = vld [vmem:[%s2717_s1 + $0x20] sm:$0xff] }
 0x678   :  { %v935_v53 = vmax.f32 %v894_v5, 0.0  ;;  %v2028_v5 = vld [vmem:[%s2717_s1 + $0x30] sm:$0xff] }
 0x67a   :  { %1887 = vmatmul.msk.f32.gmra.mxu0 %vm340_vm2, %v935_v53  ;;  %v2029_v53 = vld [vmem:[%s2717_s1 + $0x38] sm:$0xff] }
 0x67d   :  { %v896_v6 = vpop.f32.mrf.mxu3 }
 0x67e   :  { %v897_v7 = vadd.f32 %v1954_v36, %v896_v6  ;;  %v2030_v6 = vld [vmem:[%s2717_s1 + $0x40] sm:$0xff] }
 0x680   :  { %v936_v8 = vmax.f32 %v897_v7, 0.0  ;;  %v2031_v7 = vld [vmem:[%s2717_s1 + $0x48] sm:$0xff] }
 0x682   :  { %1888 = vmatmul.msk.f32.gmra.mxu0 %vm340_vm2, %v936_v8  ;;  %v2032_v8 = vld [vmem:[%s2717_s1 + $0x50] sm:$0xff] }
 0x685   :  { %v899_v9 = vpop.f32.mrf.mxu3 }
 0x686   :  { %v900_v11 = vadd.f32 %v1954_v36, %v899_v9 }
 0x688   :  { %v937_v12 = vmax.f32 %v900_v11, 0.0 }
 0x68a   :  { %1889 = vmatmul.msk.f32.gmra.mxu0 %vm340_vm2, %v937_v12 }
 0x68d   :  { %v902_v13 = vpop.f32.mrf.mxu3 }
 0x68e   :  { %v903_v14 = vadd.f32 %v1954_v36, %v902_v13 }
 0x690   :  { %v938_v15 = vmax.f32 %v903_v14, 0.0 }
 0x692   :  { %1890 = vmatmul.msk.f32.gmra.mxu0 %vm340_vm2, %v938_v15 }
 0x695   :  { %v905_v16 = vpop.f32.mrf.mxu3 }
 0x696   :  { %v906_v17 = vadd.f32 %v1954_v36, %v905_v16 }
 0x698   :  { %v939_v18 = vmax.f32 %v906_v17, 0.0 }
 0x69a   :  { %1891 = vmatmul.msk.f32.gmra.mxu0 %vm340_vm2, %v939_v18 }
 0x69d   :  { %v908_v19 = vpop.f32.mrf.mxu3 }
 0x69e   :  { %v909_v20 = vadd.f32 %v1954_v36, %v908_v19 }
 0x6a0   :  { %v940_v21 = vmax.f32 %v909_v20, 0.0  ;;  %v1955_v20 = vld [vmem:[#allocation7 + $0x4] ss:$0 sm:$0xff] }
 0x6a2   :  { %1892 = vmatmul.msk.f32.gmra.mxu0 %vm340_vm2, %v940_v21 }
 0x6a5   :  { %v911_v22 = vpop.f32.mrf.mxu3 }
 0x6a6   :  { %v912_v23 = vadd.f32 %v1954_v36, %v911_v22 }
 0x6a8   :  { %v941_v24 = vmax.f32 %v912_v23, 0.0 }
 0x6aa   :  { %1893 = vmatmul.msk.f32.gmra.mxu0 %vm340_vm2, %v941_v24 }
 0x6ad   :  { %v914_v25 = vpop.f32.mrf.mxu3 }
 0x6ae   :  { %v915_v26 = vadd.f32 %v1954_v36, %v914_v25 }
 0x6b0   :  { %v942_v27 = vmax.f32 %v915_v26, 0.0 }
 0x6b2   :  { %1894 = vmatmul.msk.f32.gmra.mxu0 %vm340_vm2, %v942_v27  ;;  %v1180_v27 = vld [vmem:[%s2722_s6 + $0x18] sm:$0xff] }
 0x6b5   :  { %v917_v10 = vpop.f32.mrf.mxu3 }
 0x6b6   :  { %v918_v28 = vadd.f32 %v1954_v36, %v917_v10  ;;  %v1179_v10 = vld [vmem:[%s2722_s6 + $0x10] sm:$0xff] }
 0x6b8   :  { %v943_v29 = vmax.f32 %v918_v28, 0.0 }
 0x6ba   :  { %1895 = vmatmul.msk.f32.gmra.mxu0 %vm340_vm2, %v943_v29 }
 0x6bd   :  { %v920_v30 = vpop.f32.mrf.mxu3 }
 0x6be   :  { %v921_v32 = vadd.f32 %v1954_v36, %v920_v30  ;;  %v1178_v30 = vld [vmem:[%s2722_s6 + $0x8] sm:$0xff] }
 0x6c0   :  { %v944_v45 = vmax.f32 %v921_v32, 0.0 }
 0x6c2   :  { %1896 = vmatmul.msk.f32.gmra.mxu0 %vm340_vm2, %v944_v45 }
 0x6c5   :  { %v923_v46 = vpop.f32.mrf.mxu3 }
 0x6c6   :  { %v924_v48 = vadd.f32 %v1954_v36, %v923_v46 }
 0x6c8   :  { %v945_v49 = vmax.f32 %v924_v48, 0.0 }
 0x6ca   :  { %1897 = vmatmul.msk.f32.gmra.mxu0 %vm340_vm2, %v945_v49 }
 0x6cd   :  { %v926_v54 = vpop.f32.mrf.mxu3 }
 0x6ce   :  { %v927_v55 = vadd.f32 %v1954_v36, %v926_v54 }
 0x6d0   :  { %v946_v56 = vmax.f32 %v927_v55, 0.0 }
 0x6d2   :  { %1898 = vmatmul.msk.f32.gmra.mxu0 %vm340_vm2, %v946_v56 }
 0x6d5   :  { %v929_v57 = vpop.f32.mrf.mxu3 }
 0x6d6   :  { %v930_v58 = vadd.f32 %v1954_v36, %v929_v57  ;;  %v2022_v36 = vld [vmem:[%s2717_s1] sm:$0xff] }
 0x6d8   :  { %v947_v59 = vmax.f32 %v930_v58, 0.0 }
 0x6da   :  { %1899 = vmatmul.msk.f32.gmra.mxu0 %vm340_vm2, %v947_v59 }
 0x6df   :  { %v1018_v60 = vpop.f32.mrf.mxu0 }
 0x6e7   :  { %v1021_v61 = vpop.f32.mrf.mxu0 }
 0x6ef   :  { %v1024_v62 = vpop.f32.mrf.mxu0 }
 0x6f7   :  { %v1027_v63 = vpop.f32.mrf.mxu0 }
 0x6ff   :  { %v1030_v0 = vpop.f32.mrf.mxu0 }
 0x707   :  { %v1033_v1 = vpop.f32.mrf.mxu0 }
 0x70f   :  { %v1036_v31 = vpop.f32.mrf.mxu0 }
 0x717   :  { %v1039_v33 = vpop.f32.mrf.mxu0 }
 0x71f   :  { %v1042_v34 = vpop.f32.mrf.mxu0 }
 0x727   :  { %v1045_v35 = vpop.f32.mrf.mxu0 }
 0x72f   :  { %v1048_v37 = vpop.f32.mrf.mxu0 }
 0x737   :  { %v1051_v38 = vpop.f32.mrf.mxu0 }
 0x73f   :  { %v1054_v39 = vpop.f32.mrf.mxu0 }
 0x747   :  { %v1057_v40 = vpop.f32.mrf.mxu0 }
 0x74f   :  { %v1060_v41 = vpop.f32.mrf.mxu0 }
 0x757   :  { %v1063_v42 = vpop.f32.mrf.mxu0 }
 0x758   :  { %1071 = vmatpush.msra.mxu2 %v1063_v42  ;;  %1923 = vmatpush.msrb.mxu3 %v1063_v42  ;;  %v1152_v42 = vld [vmem:[%s2718_s2] sm:$0xff] }
 0x75a   :  { %1072 = vmatpush.msra.mxu2 %v1060_v41  ;;  %1924 = vmatpush.msrb.mxu3 %v1060_v41 }
 0x75c   :  { %1073 = vmatpush.msra.mxu2 %v1057_v40  ;;  %1925 = vmatpush.msrb.mxu3 %v1057_v40 }
 0x75e   :  { %1074 = vmatpush.msra.mxu2 %v1054_v39  ;;  %1926 = vmatpush.msrb.mxu3 %v1054_v39 }
 0x760   :  { %1075 = vmatpush.msra.mxu2 %v1051_v38  ;;  %1927 = vmatpush.msrb.mxu3 %v1051_v38 }
 0x762   :  { %1076 = vmatpush.msra.mxu2 %v1048_v37  ;;  %1928 = vmatpush.msrb.mxu3 %v1048_v37 }
 0x764   :  { %1077 = vmatpush.msra.mxu2 %v1045_v35  ;;  %1929 = vmatpush.msrb.mxu3 %v1045_v35 }
 0x766   :  { %1078 = vmatpush.msra.mxu2 %v1042_v34  ;;  %1930 = vmatpush.msrb.mxu3 %v1042_v34 }
 0x768   :  { %1079 = vmatpush.msra.mxu2 %v1039_v33  ;;  %1931 = vmatpush.msrb.mxu3 %v1039_v33 }
 0x76a   :  { %1080 = vmatpush.msra.mxu2 %v1036_v31  ;;  %1932 = vmatpush.msrb.mxu3 %v1036_v31 }
 0x76c   :  { %1081 = vmatpush.msra.mxu2 %v1033_v1  ;;  %1933 = vmatpush.msrb.mxu3 %v1033_v1 }
 0x76e   :  { %1082 = vmatpush.msra.mxu2 %v1030_v0  ;;  %1934 = vmatpush.msrb.mxu3 %v1030_v0 }
 0x770   :  { %1083 = vmatpush.msra.mxu2 %v1027_v63  ;;  %1935 = vmatpush.msrb.mxu3 %v1027_v63 }
 0x772   :  { %1084 = vmatpush.msra.mxu2 %v1024_v62  ;;  %1936 = vmatpush.msrb.mxu3 %v1024_v62 }
 0x774   :  { %1085 = vmatpush.msra.mxu2 %v1021_v61  ;;  %1937 = vmatpush.msrb.mxu3 %v1021_v61 }
 0x776   :  { %1086 = vmatpush.msra.mxu2 %v1018_v60  ;;  %1938 = vmatpush.msrb.mxu3 %v1018_v60 }
 0x777   :  { %1087 = vmatmul.f32.vlgmr.msra.gmra.mxu2 %v2022_v36  ;;  %1132 = vmatmul.f32.vlgmr.msrb.gmra.mxu3 %v2402_v52  ;;  %v2027_v52 = vld [vmem:[%s2717_s1 + $0x28] sm:$0xff]  ;;  %v1177_v36 = vld [vmem:[%s2722_s6] sm:$0xff] }
 0x778   :  { %1203 = vmatpush.msra.mxu3 %v1180_v27 }
 0x77a   :  { %1204 = vmatpush.msra.mxu3 %v1179_v10 }
 0x77c   :  { %1205 = vmatpush.msra.mxu3 %v1178_v30 }
 0x77e   :  { %1206 = vmatpush.msra.mxu3 %v1177_v36 }
 0x77f   :  { %1090 = vmatmul.f32.gmra.mxu2 %v2023_v43  ;;  %v1153_v43 = vld [vmem:[%s2718_s2 + $0x8] sm:$0xff] }
 0x787   :  { %1093 = vmatmul.f32.gmra.mxu2 %v2024_v2  ;;  %v2594_v2 = vld [vmem:[#allocation8 + $0x18] sm:$0xff] }
 0x788   :  { %1296 = vmatpush.msrb.mxu3 %v2594_v2 }
 0x78f   :  { %1096 = vmatmul.f32.gmra.mxu2 %v2025_v3  ;;  %v2596_v3 = vld [vmem:[#allocation8 + $0x10] sm:$0xff] }
 0x790   :  { %1297 = vmatpush.msrb.mxu3 %v2596_v3 }
 0x797   :  { %1099 = vmatmul.f32.gmra.mxu2 %v2026_v4  ;;  %v2600_v4 = vld [vmem:[#allocation8 + $0x8] sm:$0xff] }
 0x798   :  { %1298 = vmatpush.msrb.mxu3 %v2600_v4 }
 0x79f   :  { %1102 = vmatmul.f32.gmra.mxu2 %v2027_v52  ;;  %v2604_v52 = vld [vmem:[#allocation8] sm:$0xff] }
 0x7a0   :  { %1299 = vmatpush.msrb.mxu3 %v2604_v52 }
 0x7a7   :  { %1105 = vmatmul.f32.gmra.mxu2 %v2028_v5  ;;  %v2169_v5 = vmov 0.0  }
 0x7af   :  { %1108 = vmatmul.f32.gmra.mxu2 %v2029_v53 }
 0x7b7   :  { %1111 = vmatmul.f32.gmra.mxu2 %v2030_v6 }
 0x7bf   :  { %1114 = vmatmul.f32.gmra.mxu2 %v2031_v7  ;;  %v2627_v7 = vld [vmem:[%s2724_s8] ss:$0 sm:$0xff]  ;;  %s2171_s8 = smov 32  }
 0x7c7   :  { %1117 = vmatmul.f32.gmra.mxu2 %v2032_v8 }
 0x7cf   :  { %1120 = vmatmul.f32.gmra.mxu2 %v2378_v44 }
 0x7d7   :  { %1123 = vmatmul.f32.gmra.mxu2 %v2384_v47 }
 0x7df   :  { %1126 = vmatmul.f32.gmra.mxu2 %v2390_v50 }
 0x7e7   :  { %1129 = vmatmul.f32.gmra.mxu2 %v2396_v51 }
 0x7fa   :  { %v2573_v9 = vpop.f32.mrf.mxu2  ;;  %v1133_v21 = vpop.f32.mrf.mxu3 }
 0x7fb   :  { %v1134_v44 = vadd.f32 %v1955_v20, %v1133_v21  ;;  %v1089_v38 = vadd.f32 %v1955_v20, %v2573_v9 }
 0x7fd   :  { %v1151_v22 = vmax.f32 %v1134_v44, 0.0  ;;  %v1136_v41 = vmax.f32 %v1089_v38, 0.0 }
 0x7ff   :  { %1154 = vmatpush.msrb.mxu1 %v1151_v22 }
 0x802   :  { %v1091_v11 = vpop.f32.mrf.mxu2 }
 0x803   :  { %v1092_v35 = vadd.f32 %v1955_v20, %v1091_v11 }
 0x805   :  { %v1137_v40 = vmax.f32 %v1092_v35, 0.0 }
 0x80a   :  { %v1094_v12 = vpop.f32.mrf.mxu2 }
 0x80b   :  { %v1095_v33 = vadd.f32 %v1955_v20, %v1094_v12 }
 0x80d   :  { %v1138_v39 = vmax.f32 %v1095_v33, 0.0 }
 0x812   :  { %v1097_v13 = vpop.f32.mrf.mxu2 }
 0x813   :  { %v1098_v1 = vadd.f32 %v1955_v20, %v1097_v13 }
 0x815   :  { %v1139_v37 = vmax.f32 %v1098_v1, 0.0 }
 0x81a   :  { %v1100_v14 = vpop.f32.mrf.mxu2 }
 0x81b   :  { %v1101_v63 = vadd.f32 %v1955_v20, %v1100_v14 }
 0x81d   :  { %v1140_v34 = vmax.f32 %v1101_v63, 0.0 }
 0x822   :  { %v1103_v15 = vpop.f32.mrf.mxu2 }
 0x823   :  { %v1104_v61 = vadd.f32 %v1955_v20, %v1103_v15 }
 0x825   :  { %v1141_v31 = vmax.f32 %v1104_v61, 0.0 }
 0x82a   :  { %v1106_v16 = vpop.f32.mrf.mxu2 }
 0x82b   :  { %v1107_v59 = vadd.f32 %v1955_v20, %v1106_v16 }
 0x82d   :  { %v1142_v0 = vmax.f32 %v1107_v59, 0.0 }
 0x832   :  { %v1109_v17 = vpop.f32.mrf.mxu2 }
 0x833   :  { %v1110_v57 = vadd.f32 %v1955_v20, %v1109_v17 }
 0x835   :  { %v1143_v62 = vmax.f32 %v1110_v57, 0.0 }
 0x83a   :  { %v1112_v18 = vpop.f32.mrf.mxu2 }
 0x83b   :  { %v1113_v55 = vadd.f32 %v1955_v20, %v1112_v18 }
 0x83d   :  { %v1144_v60 = vmax.f32 %v1113_v55, 0.0 }
 0x842   :  { %v1115_v19 = vpop.f32.mrf.mxu2 }
 0x843   :  { %v1116_v49 = vadd.f32 %v1955_v20, %v1115_v19 }
 0x845   :  { %v1145_v58 = vmax.f32 %v1116_v49, 0.0 }
 0x84a   :  { %v1118_v47 = vpop.f32.mrf.mxu2 }
 0x84b   :  { %v1119_v46 = vadd.f32 %v1955_v20, %v1118_v47 }
 0x84d   :  { %v1146_v56 = vmax.f32 %v1119_v46, 0.0 }
 0x852   :  { %v1121_v50 = vpop.f32.mrf.mxu2 }
 0x853   :  { %v1122_v32 = vadd.f32 %v1955_v20, %v1121_v50 }
 0x855   :  { %v1147_v54 = vmax.f32 %v1122_v32, 0.0 }
 0x85a   :  { %v1124_v23 = vpop.f32.mrf.mxu2 }
 0x85b   :  { %v1125_v28 = vadd.f32 %v1955_v20, %v1124_v23 }
 0x85d   :  { %v1148_v48 = vmax.f32 %v1125_v28, 0.0 }
 0x862   :  { %v1127_v51 = vpop.f32.mrf.mxu2 }
 0x863   :  { %v1128_v25 = vadd.f32 %v1955_v20, %v1127_v51 }
 0x865   :  { %v1149_v45 = vmax.f32 %v1128_v25, 0.0 }
 0x86a   :  { %v1130_v24 = vpop.f32.mrf.mxu2 }
 0x86b   :  { %v1131_v26 = vadd.f32 %v1955_v20, %v1130_v24 }
 0x86d   :  { %v1150_v29 = vmax.f32 %v1131_v26, 0.0 }
 0x86f   :  { %1155 = vmatpush.msrb.mxu1 %v1150_v29 }
 0x871   :  { %1156 = vmatpush.msrb.mxu1 %v1149_v45 }
 0x873   :  { %1157 = vmatpush.msrb.mxu1 %v1148_v48 }
 0x875   :  { %1158 = vmatpush.msrb.mxu1 %v1147_v54 }
 0x877   :  { %1159 = vmatpush.msrb.mxu1 %v1146_v56 }
 0x879   :  { %1160 = vmatpush.msrb.mxu1 %v1145_v58 }
 0x87b   :  { %1161 = vmatpush.msrb.mxu1 %v1144_v60 }
 0x87d   :  { %1162 = vmatpush.msrb.mxu1 %v1143_v62 }
 0x87f   :  { %1163 = vmatpush.msrb.mxu1 %v1142_v0 }
 0x881   :  { %1164 = vmatpush.msrb.mxu1 %v1141_v31 }
 0x883   :  { %1165 = vmatpush.msrb.mxu1 %v1140_v34 }
 0x885   :  { %1166 = vmatpush.msrb.mxu1 %v1139_v37 }
 0x887   :  { %1167 = vmatpush.msrb.mxu1 %v1138_v39 }
 0x889   :  { %1168 = vmatpush.msrb.mxu1 %v1137_v40 }
 0x88b   :  { %1169 = vmatpush.msrb.mxu1 %v1136_v41 }
 0x88c   :  { %1170 = vmatmul.f32.vlgmr.msrb.gmra.mxu1 %v1152_v42 }
 0x88d   :  { %1233 = vmatpush.msra.mxu1 %v2594_v2 }
 0x88f   :  { %1234 = vmatpush.msra.mxu1 %v2596_v3 }
 0x891   :  { %1235 = vmatpush.msra.mxu1 %v2600_v4 }
 0x893   :  { %1236 = vmatpush.msra.mxu1 %v2604_v52 }
 0x894   :  { %1173 = vmatmul.f32.gmra.mxu1 %v1153_v43 }
 0x895   :  { %1366 = vmatpush.msrb.mxu1 %v2594_v2 }
 0x897   :  { %1367 = vmatpush.msrb.mxu1 %v2596_v3 }
 0x899   :  { %1368 = vmatpush.msrb.mxu1 %v2600_v4 }
 0x89b   :  { %1369 = vmatpush.msrb.mxu1 %v2604_v52 }
 0x89c   :  { %1237 = vmatmul.f32.vlgmr.msra.gmra.mxu1 %v2169_v5 }
 0x89d   :  { %1506 = vmatpush.msra.mxu1 %v2594_v2 }
 0x89f   :  { %1507 = vmatpush.msra.mxu1 %v2596_v3 }
 0x8a1   :  { %1508 = vmatpush.msra.mxu1 %v2600_v4 }
 0x8a3   :  { %1509 = vmatpush.msra.mxu1 %v2604_v52 }
 0x909   :  { %v1171_v53 = vpop.f32.mrf.mxu1 }
 0x90a   :  { %1900 = vmatmul.msk.f32.vlgmr.msra.gmra.mxu3 %vm340_vm2, %v1171_v53 }
 0x90b   :  { %1436 = vmatpush.msra.mxu3 %v2594_v2 }
 0x90d   :  { %1437 = vmatpush.msra.mxu3 %v2596_v3 }
 0x90f   :  { %1438 = vmatpush.msra.mxu3 %v2600_v4 }
 0x911   :  { %1439 = vmatpush.msra.mxu3 %v2604_v52  ;;  %v1174_v6 = vpop.f32.mrf.mxu1 }
 0x912   :  { %1901 = vmatmul.msk.f32.gmra.mxu3 %vm340_vm2, %v1174_v6 }
 0x919   :  { %v1238_v9 = vpop.f32.mrf.mxu1 }
 0x98d   :  { %v1208_v8 = vpop.f32.mrf.mxu3 }
 0x98e   :  { %v2630_v11 = vadd.f32 %v2627_v7, %v1208_v8 }
 0x990   :  { %v1241_v12 = vadd.f32 %v1238_v9, %v2630_v11 }
 0x992   :  { %1958 = vtanh.f32 %v1241_v12  ;;  %v1902_v14 = vmul.f32 -1.442695, %v1241_v12 }
 0x994   :  { %1960 = vpow2.f32 %v1902_v14 }
 0x995   :  { %v2642_v32 = vpop.f32.mrf.mxu3 }
 0x998   :  { %v1959_v13 = vpop.eup %1958 }
 0x999   :  { %1264 = vrot.lane.b32.xlu0 %v1959_v13, %s2170_s7 }
 0x99a   :  { %v1961_v15 = vpop.eup %1960 }
 0x99b   :  { %v1245_v16 = vadd.f32 1.0, %v1961_v15 }
 0x99d   :  { %1962 = vrcp.f32 %v1245_v16  ;;  %v1257_v44 = vand.u32 2147483648, %v1245_v16  ;;  %vm1251_vm4 = vweird.f32 %v1245_v16  ;;  %v1255_v22 = vand.u32 2147483647, %v1245_v16 }
 0x99f   :  { %v1258_v50 = vor.u32 1.1754944e-38, %v1257_v44  ;;  %vm1256_vm6 = vcmp.eq.f32.partialorder %v1255_v22, 8.507059e+37 }
 0x9a3   :  { %v1963_v17 = vpop.eup %1962 }
 0x9a4   :  { %v1247_v18 = vmul.f32 %v1963_v17, %v1245_v16  ;;  %vm1252_vm3 = vweird.f32 %v1963_v17 }
 0x9a5   :  { %vm1253_vm5 = vmor %vm1251_vm4, %vm1252_vm3 }
 0x9a6   :  { %v1248_v19 = vsub.f32 1.0, %v1247_v18 }
 0x9a8   :  { %v1249_v20 = vmul.f32 %v1963_v17, %v1248_v19 }
 0x9aa   :  { %v1250_v21 = vadd.f32 %v1963_v17, %v1249_v20 }
 0x9ac   :  { %v1254_v47 = vsel %vm1253_vm5, %v1963_v17, %v1250_v21 }
 0x9ad   :  { %v1259_v51 = vsel %vm1256_vm6, %v1258_v50, %v1254_v47 }
 0x9ae   :  { %v1262_v25 = vmul.f32 0.0, %v1259_v51 }
 0xa0b   :  { %v1265_v23 = vpop.permute.xlu0 %1264 }
 0xa0c   :  { %v1267_v24 = vmul.f32 %v1265_v23, %v1259_v51 }
 0xa0e   :  { %1269 = vrot.lane.b32.xlu0 %v1267_v24, %s2171_s8 }
 0xa80   :  { %v1270_v26 = vpop.permute.xlu0 %1269 }
 0xa81   :  { %v1272_v27 = vadd.f32 %v1270_v26, %v1262_v25 }
 0xa83   :  { %1964 = vtanh.f32 %v1272_v27  ;;  %v1329_v35 = vrot.slane %v1272_v27, 6 }
 0xa89   :  { %v1965_v10 = vpop.eup %1964 }
 0xa8a   :  { %1275 = vrot.lane.b32.xlu1 %v1965_v10, %s2170_s7 }
 0xafc   :  { %v1276_v28 = vpop.permute.xlu1 %1275 }
 0xafd   :  { %v1278_v29 = vmul.f32 %v1276_v28, %v1259_v51 }
 0xaff   :  { %1280 = vrot.lane.b32.xlu1 %v1278_v29, %s2171_s8 }
 0xb71   :  { %v1281_v30 = vpop.permute.xlu1 %1280 }
 0xb72   :  { %1903 = vmatmul.msk.f32.vlgmr.msrb.gmra.mxu3 %vm340_vm2, %v1281_v30 }
 0xb73   :  { %1572 = vmatpush.msrb.mxu3 %v2594_v2 }
 0xb75   :  { %1573 = vmatpush.msrb.mxu3 %v2596_v3 }
 0xb77   :  { %1574 = vmatpush.msrb.mxu3 %v2600_v4 }
 0xb79   :  { %1575 = vmatpush.msrb.mxu3 %v2604_v52 }
 0xbf5   :  { %v1301_v45 = vpop.f32.mrf.mxu3 }
 0xbf6   :  { %v1305_v46 = vrot.slane %v1301_v45, 6 }
 0xbf8   :  { %v1307_v48 = vadd.f32 %v1305_v46, %v2630_v11 }
 0xbfa   :  { %1966 = vtanh.f32 %v1307_v48  ;;  %v1904_v54 = vmul.f32 -1.442695, %v1307_v48 }
 0xbfc   :  { %1968 = vpow2.f32 %v1904_v54 }
 0xc00   :  { %v1967_v49 = vpop.eup %1966 }
 0xc01   :  { %1333 = vrot.lane.b32.xlu2 %v1967_v49, %s2170_s7 }
 0xc02   :  { %v1969_v55 = vpop.eup %1968 }
 0xc03   :  { %v1311_v56 = vadd.f32 1.0, %v1969_v55 }
 0xc05   :  { %1970 = vrcp.f32 %v1311_v56  ;;  %v1323_v62 = vand.u32 2147483648, %v1311_v56  ;;  %vm1317_vm8 = vweird.f32 %v1311_v56  ;;  %v1321_v63 = vand.u32 2147483647, %v1311_v56 }
 0xc07   :  { %v1324_v1 = vor.u32 1.1754944e-38, %v1323_v62  ;;  %vm1322_vm10 = vcmp.eq.f32.partialorder %v1321_v63, 8.507059e+37 }
 0xc0b   :  { %v1971_v57 = vpop.eup %1970 }
 0xc0c   :  { %v1313_v58 = vmul.f32 %v1971_v57, %v1311_v56  ;;  %vm1318_vm7 = vweird.f32 %v1971_v57 }
 0xc0d   :  { %vm1319_vm9 = vmor %vm1317_vm8, %vm1318_vm7 }
 0xc0e   :  { %v1314_v59 = vsub.f32 1.0, %v1313_v58 }
 0xc10   :  { %v1315_v60 = vmul.f32 %v1971_v57, %v1314_v59 }
 0xc12   :  { %v1316_v61 = vadd.f32 %v1971_v57, %v1315_v60 }
 0xc14   :  { %v1320_v0 = vsel %vm1319_vm9, %v1971_v57, %v1316_v61 }
 0xc15   :  { %v1325_v33 = vsel %vm1322_vm10, %v1324_v1, %v1320_v0 }
 0xc16   :  { %v1331_v37 = vmul.f32 %v1329_v35, %v1325_v33 }
 0xc5b   :  { %v1334_v31 = vpop.permute.xlu2 %1333 }
 0xc5c   :  { %v1336_v34 = vmul.f32 %v1334_v31, %v1325_v33 }
 0xc5e   :  { %1338 = vrot.lane.b32.xlu2 %v1336_v34, %s2171_s8 }
 0xcb8   :  { %v1339_v38 = vpop.permute.xlu2 %1338 }
 0xcb9   :  { %v1341_v39 = vadd.f32 %v1339_v38, %v1331_v37 }
 0xcbb   :  { %1972 = vtanh.f32 %v1341_v39  ;;  %v1399_v23 = vrot.slane %v1341_v39, 6  ;;  %v2672_v39 = vadd.f32 %v2627_v7, %v2642_v32 }
 0xcc1   :  { %v1973_v40 = vpop.eup %1972 }
 0xcc2   :  { %1344 = vrot.lane.b32.xlu0 %v1973_v40, %s2170_s7 }
 0xd34   :  { %v1345_v41 = vpop.permute.xlu0 %1344 }
 0xd35   :  { %v1347_v42 = vmul.f32 %v1345_v41, %v1325_v33 }
 0xd37   :  { %v1349_v36 = vrot.slane %v1347_v42, 2 }
 0xd39   :  { %1350 = vrot.lane.b32.xlu1 %v1349_v36, %s2171_s8 }
 0xdab   :  { %v1351_v43 = vpop.permute.xlu1 %1350 }
 0xdac   :  { %1905 = vmatmul.msk.f32.vlgmr.msrb.gmra.mxu1 %vm340_vm2, %v1351_v43 }
 0xdad   :  { %1642 = vmatpush.msrb.mxu1 %v2594_v2 }
 0xdaf   :  { %1643 = vmatpush.msrb.mxu1 %v2596_v3 }
 0xdb1   :  { %1644 = vmatpush.msrb.mxu1 %v2600_v4 }
 0xdb3   :  { %1645 = vmatpush.msrb.mxu1 %v2604_v52 }
 0xe29   :  { %v1371_v5 = vpop.f32.mrf.mxu1 }
 0xe2a   :  { %v1375_v53 = vrot.slane %v1371_v5, 4 }
 0xe2c   :  { %v1377_v6 = vadd.f32 %v1375_v53, %v2630_v11 }
 0xe2e   :  { %1974 = vtanh.f32 %v1377_v6  ;;  %v1906_v9 = vmul.f32 -1.442695, %v1377_v6 }
 0xe30   :  { %1976 = vpow2.f32 %v1906_v9 }
 0xe34   :  { %v1975_v8 = vpop.eup %1974 }
 0xe35   :  { %1403 = vrot.lane.b32.xlu2 %v1975_v8, %s2170_s7 }
 0xe36   :  { %v1977_v12 = vpop.eup %1976 }
 0xe37   :  { %v1381_v13 = vadd.f32 1.0, %v1977_v12 }
 0xe39   :  { %1978 = vrcp.f32 %v1381_v13  ;;  %v1393_v19 = vand.u32 2147483648, %v1381_v13  ;;  %vm1387_vm12 = vweird.f32 %v1381_v13  ;;  %v1391_v20 = vand.u32 2147483647, %v1381_v13 }
 0xe3b   :  { %v1394_v44 = vor.u32 1.1754944e-38, %v1393_v19  ;;  %vm1392_vm14 = vcmp.eq.f32.partialorder %v1391_v20, 8.507059e+37 }
 0xe3f   :  { %v1979_v14 = vpop.eup %1978 }
 0xe40   :  { %v1383_v15 = vmul.f32 %v1979_v14, %v1381_v13  ;;  %vm1388_vm11 = vweird.f32 %v1979_v14 }
 0xe41   :  { %vm1389_vm13 = vmor %vm1387_vm12, %vm1388_vm11 }
 0xe42   :  { %v1384_v16 = vsub.f32 1.0, %v1383_v15 }
 0xe44   :  { %v1385_v17 = vmul.f32 %v1979_v14, %v1384_v16 }
 0xe46   :  { %v1386_v18 = vadd.f32 %v1979_v14, %v1385_v17 }
 0xe48   :  { %v1390_v21 = vsel %vm1389_vm13, %v1979_v14, %v1386_v18 }
 0xe49   :  { %v1395_v47 = vsel %vm1392_vm14, %v1394_v44, %v1390_v21 }
 0xe4a   :  { %v1401_v51 = vmul.f32 %v1399_v23, %v1395_v47 }
 0xe8f   :  { %v1404_v22 = vpop.permute.xlu2 %1403 }
 0xe90   :  { %v1406_v50 = vmul.f32 %v1404_v22, %v1395_v47 }
 0xe92   :  { %1408 = vrot.lane.b32.xlu0 %v1406_v50, %s2171_s8 }
 0xf04   :  { %v1409_v24 = vpop.permute.xlu0 %1408 }
 0xf05   :  { %v1411_v25 = vadd.f32 %v1409_v24, %v1401_v51 }
 0xf07   :  { %1980 = vtanh.f32 %v1411_v25  ;;  %v1469_v63 = vrot.slane %v1411_v25, 6 }
 0xf0d   :  { %v1981_v26 = vpop.eup %1980 }
 0xf0e   :  { %1414 = vrot.lane.b32.xlu1 %v1981_v26, %s2170_s7 }
 0xf80   :  { %v1415_v27 = vpop.permute.xlu1 %1414 }
 0xf81   :  { %v1417_v10 = vmul.f32 %v1415_v27, %v1395_v47 }
 0xf83   :  { %v1419_v28 = vrot.slane %v1417_v10, 4 }
 0xf85   :  { %1420 = vrot.lane.b32.xlu2 %v1419_v28, %s2171_s8 }
 0xfdf   :  { %v1421_v29 = vpop.permute.xlu2 %1420 }
 0xfe0   :  { %1907 = vmatmul.msk.f32.vlgmr.msra.gmra.mxu3 %vm340_vm2, %v1421_v29 }
 0xfe1   :  { %1712 = vmatpush.msra.mxu3 %v2594_v2 }
 0xfe3   :  { %1713 = vmatpush.msra.mxu3 %v2596_v3 }
 0xfe5   :  { %1714 = vmatpush.msra.mxu3 %v2600_v4 }
 0xfe7   :  { %1715 = vmatpush.msra.mxu3 %v2604_v52 }
0x1063   :  { %v1441_v30 = vpop.f32.mrf.mxu3 }
0x1064   :  { %v1445_v45 = vrot.slane %v1441_v30, 2 }
0x1066   :  { %v1447_v46 = vadd.f32 %v1445_v45, %v2630_v11 }
0x1068   :  { %1982 = vtanh.f32 %v1447_v46  ;;  %v1908_v49 = vmul.f32 -1.442695, %v1447_v46 }
0x106a   :  { %1984 = vpow2.f32 %v1908_v49 }
0x106e   :  { %v1983_v48 = vpop.eup %1982 }
0x106f   :  { %1473 = vrot.lane.b32.xlu0 %v1983_v48, %s2170_s7 }
0x1070   :  { %v1985_v54 = vpop.eup %1984 }
0x1071   :  { %v1451_v55 = vadd.f32 1.0, %v1985_v54 }
0x1073   :  { %1986 = vrcp.f32 %v1451_v55  ;;  %v1463_v52 = vand.u32 2147483648, %v1451_v55  ;;  %vm1457_vm0 = vweird.f32 %v1451_v55  ;;  %v1461_v58 = vand.u32 2147483647, %v1451_v55 }
0x1075   :  { %v1464_v59 = vor.u32 1.1754944e-38, %v1463_v52  ;;  %vm1462_vm3 = vcmp.eq.f32.partialorder %v1461_v58, 8.507059e+37 }
0x1079   :  { %v1987_v2 = vpop.eup %1986 }
0x107a   :  { %v1453_v56 = vmul.f32 %v1987_v2, %v1451_v55  ;;  %vm1458_vm15 = vweird.f32 %v1987_v2 }
0x107b   :  { %vm1459_vm1 = vmor %vm1457_vm0, %vm1458_vm15 }
0x107c   :  { %v1454_v3 = vsub.f32 1.0, %v1453_v56 }
0x107e   :  { %v1455_v57 = vmul.f32 %v1987_v2, %v1454_v3 }
0x1080   :  { %v1456_v4 = vadd.f32 %v1987_v2, %v1455_v57 }
0x1082   :  { %v1460_v11 = vsel %vm1459_vm1, %v1987_v2, %v1456_v4 }
0x1083   :  { %v1465_v61 = vsel %vm1462_vm3, %v1464_v59, %v1460_v11 }
0x1084   :  { %v1471_v0 = vmul.f32 %v1469_v63, %v1465_v61 }
0x10e1   :  { %v1474_v60 = vpop.permute.xlu0 %1473 }
0x10e2   :  { %v1476_v62 = vmul.f32 %v1474_v60, %v1465_v61 }
0x10e4   :  { %1478 = vrot.lane.b32.xlu1 %v1476_v62, %s2171_s8 }
0x1156   :  { %v1479_v1 = vpop.permute.xlu1 %1478 }
0x1157   :  { %v1481_v31 = vadd.f32 %v1479_v1, %v1471_v0 }
0x1159   :  { %1988 = vtanh.f32 %v1481_v31  ;;  %v1536_v18 = vrot.slane %v1481_v31, 6 }
0x115f   :  { %v1989_v33 = vpop.eup %1988 }
0x1160   :  { %1484 = vrot.lane.b32.xlu2 %v1989_v33, %s2170_s7 }
0x11ba   :  { %v1485_v34 = vpop.permute.xlu2 %1484 }
0x11bb   :  { %v1487_v35 = vmul.f32 %v1485_v34, %v1465_v61 }
0x11bd   :  { %v1489_v37 = vrot.slane %v1487_v35, 6 }
0x11bf   :  { %1490 = vrot.lane.b32.xlu0 %v1489_v37, %s2171_s8 }
0x1231   :  { %v1491_v38 = vpop.permute.xlu0 %1490 }
0x1232   :  { %1909 = vmatmul.msk.f32.vlgmr.msra.gmra.mxu1 %vm340_vm2, %v1491_v38 }
0x12af   :  { %v1511_v40 = vpop.f32.mrf.mxu1 }
0x12b0   :  { %v1514_v41 = vadd.f32 %v1511_v40, %v2672_v39 }
0x12b2   :  { %1990 = vtanh.f32 %v1514_v41  ;;  %v1910_v36 = vmul.f32 -1.442695, %v1514_v41 }
0x12b4   :  { %1992 = vpow2.f32 %v1910_v36 }
0x12b8   :  { %v1991_v42 = vpop.eup %1990 }
0x12b9   :  { %1540 = vrot.lane.b32.xlu1 %v1991_v42, %s2170_s7 }
0x12ba   :  { %v1993_v43 = vpop.eup %1992 }
0x12bb   :  { %v1518_v5 = vadd.f32 1.0, %v1993_v43 }
0x12bd   :  { %1994 = vrcp.f32 %v1518_v5  ;;  %v1530_v7 = vand.u32 2147483648, %v1518_v5  ;;  %vm1524_vm5 = vweird.f32 %v1518_v5  ;;  %v1528_v32 = vand.u32 2147483647, %v1518_v5 }
0x12bf   :  { %v1531_v14 = vor.u32 1.1754944e-38, %v1530_v7  ;;  %vm1529_vm7 = vcmp.eq.f32.partialorder %v1528_v32, 8.507059e+37 }
0x12c3   :  { %v1995_v53 = vpop.eup %1994 }
0x12c4   :  { %v1520_v6 = vmul.f32 %v1995_v53, %v1518_v5  ;;  %vm1525_vm4 = vweird.f32 %v1995_v53 }
0x12c5   :  { %vm1526_vm6 = vmor %vm1524_vm5, %vm1525_vm4  ;;  %vm1798_vm5 = vcmask 58368  }
0x12c6   :  { %v1521_v8 = vsub.f32 1.0, %v1520_v6 }
0x12c8   :  { %v1522_v9 = vmul.f32 %v1995_v53, %v1521_v8 }
0x12ca   :  { %v1523_v12 = vadd.f32 %v1995_v53, %v1522_v9 }
0x12cc   :  { %v1527_v13 = vsel %vm1526_vm6, %v1995_v53, %v1523_v12 }
0x12cd   :  { %v1532_v16 = vsel %vm1529_vm7, %v1531_v14, %v1527_v13 }
0x12ce   :  { %v1538_v19 = vmul.f32 %v1536_v18, %v1532_v16 }
0x132b   :  { %v1541_v15 = vpop.permute.xlu1 %1540 }
0x132c   :  { %v1543_v17 = vmul.f32 %v1541_v15, %v1532_v16 }
0x132e   :  { %1545 = vrot.lane.b32.xlu2 %v1543_v17, %s2171_s8 }
0x1388   :  { %v1546_v20 = vpop.permute.xlu2 %1545 }
0x1389   :  { %v1548_v21 = vadd.f32 %v1546_v20, %v1538_v19 }
0x138b   :  { %1996 = vtanh.f32 %v1548_v21  ;;  %v1605_v57 = vrot.slane %v1548_v21, 6 }
0x1391   :  { %v1997_v44 = vpop.eup %1996 }
0x1392   :  { %1551 = vrot.lane.b32.xlu0 %v1997_v44, %s2170_s7 }
0x1404   :  { %v1552_v22 = vpop.permute.xlu0 %1551 }
0x1405   :  { %v1554_v47 = vmul.f32 %v1552_v22, %v1532_v16 }
0x1407   :  { %1556 = vrot.lane.b32.xlu1 %v1554_v47, %s2171_s8 }
0x1479   :  { %v1557_v50 = vpop.permute.xlu1 %1556 }
0x147a   :  { %1911 = vmatmul.msk.f32.vlgmr.msrb.gmra.mxu3 %vm340_vm2, %v1557_v50 }
0x14fd   :  { %v1577_v23 = vpop.f32.mrf.mxu3 }
0x14fe   :  { %v1581_v51 = vrot.slane %v1577_v23, 6 }
0x1500   :  { %v1583_v24 = vadd.f32 %v1581_v51, %v2672_v39 }
0x1502   :  { %1998 = vtanh.f32 %v1583_v24  ;;  %v1912_v26 = vmul.f32 -1.442695, %v1583_v24 }
0x1504   :  { %2000 = vpow2.f32 %v1912_v26 }
0x1508   :  { %v1999_v25 = vpop.eup %1998 }
0x1509   :  { %1609 = vrot.lane.b32.xlu2 %v1999_v25, %s2170_s7 }
0x150a   :  { %v2001_v27 = vpop.eup %2000 }
0x150b   :  { %v1587_v10 = vadd.f32 1.0, %v2001_v27 }
0x150d   :  { %2002 = vrcp.f32 %v1587_v10  ;;  %v1599_v48 = vand.u32 2147483648, %v1587_v10  ;;  %vm1593_vm9 = vweird.f32 %v1587_v10  ;;  %v1597_v49 = vand.u32 2147483647, %v1587_v10 }
0x150f   :  { %v1600_v55 = vor.u32 1.1754944e-38, %v1599_v48  ;;  %vm1598_vm11 = vcmp.eq.f32.partialorder %v1597_v49, 8.507059e+37 }
0x1513   :  { %v2003_v28 = vpop.eup %2002 }
0x1514   :  { %v1589_v29 = vmul.f32 %v2003_v28, %v1587_v10  ;;  %vm1594_vm8 = vweird.f32 %v2003_v28 }
0x1515   :  { %vm1595_vm10 = vmor %vm1593_vm9, %vm1594_vm8 }
0x1516   :  { %v1590_v30 = vsub.f32 1.0, %v1589_v29 }
0x1518   :  { %v1591_v45 = vmul.f32 %v2003_v28, %v1590_v30 }
0x151a   :  { %v1592_v46 = vadd.f32 %v2003_v28, %v1591_v45 }
0x151c   :  { %v1596_v54 = vsel %vm1595_vm10, %v2003_v28, %v1592_v46 }
0x151d   :  { %v1601_v56 = vsel %vm1598_vm11, %v1600_v55, %v1596_v54 }
0x151e   :  { %v1607_v4 = vmul.f32 %v1605_v57, %v1601_v56  ;;  %v1764_v57 = vld [vmem:[%s2725_s9] sm:$0xff] }
0x1563   :  { %v1610_v2 = vpop.permute.xlu2 %1609 }
0x1564   :  { %v1612_v3 = vmul.f32 %v1610_v2, %v1601_v56  ;;  %v1767_v2 = vld [vmem:[%s2725_s9 + $0x18] sm:$0xff] }
0x1565   :  { %1790 = vmatpush.msra.mxu1 %v1767_v2 }
0x1566   :  { %1614 = vrot.lane.b32.xlu0 %v1612_v3, %s2171_s8  ;;  %v1765_v3 = vld [vmem:[%s2725_s9 + $0x8] sm:$0xff] }
0x15d8   :  { %v1615_v52 = vpop.permute.xlu0 %1614 }
0x15d9   :  { %v1617_v58 = vadd.f32 %v1615_v52, %v1607_v4 }
0x15db   :  { %2004 = vtanh.f32 %v1617_v58  ;;  %v1675_v12 = vrot.slane %v1617_v58, 6 }
0x15e1   :  { %v2005_v11 = vpop.eup %2004 }
0x15e2   :  { %1620 = vrot.lane.b32.xlu1 %v2005_v11, %s2170_s7 }
0x1654   :  { %v1621_v59 = vpop.permute.xlu1 %1620 }
0x1655   :  { %v1623_v60 = vmul.f32 %v1621_v59, %v1601_v56  ;;  %v1766_v56 = vld [vmem:[%s2725_s9 + $0x10] sm:$0xff]  ;;  %v1957_v59 = vld [vmem:[%s2726_s10] ss:$0 sm:$0xff]  ;;  %s1807_s9 = sshll.u32 %s2727_s11, 4  ;;  %s1808_s9 = int_to_ptr.hbm [resolvable:$true] %s1807_s9 }
0x1656   :  { %1791 = vmatpush.msra.mxu1 %v1766_v56 }
0x1657   :  { %v1625_v61 = vrot.slane %v1623_v60, 2 }
0x1658   :  { %1792 = vmatpush.msra.mxu1 %v1765_v3 }
0x1659   :  { %1626 = vrot.lane.b32.xlu2 %v1625_v61, %s2171_s8 }
0x165a   :  { %1793 = vmatpush.msra.mxu1 %v1764_v57 }
0x16b3   :  { %v1627_v62 = vpop.permute.xlu2 %1626 }
0x16b4   :  { %1913 = vmatmul.msk.f32.vlgmr.msrb.gmra.mxu1 %vm340_vm2, %v1627_v62 }
0x1731   :  { %v1647_v63 = vpop.f32.mrf.mxu1 }
0x1732   :  { %v1651_v0 = vrot.slane %v1647_v63, 4 }
0x1734   :  { %v1653_v1 = vadd.f32 %v1651_v0, %v2672_v39 }
0x1736   :  { %2006 = vtanh.f32 %v1653_v1  ;;  %v1914_v33 = vmul.f32 -1.442695, %v1653_v1 }
0x1738   :  { %2008 = vpow2.f32 %v1914_v33 }
0x173c   :  { %v2007_v31 = vpop.eup %2006 }
0x173d   :  { %1679 = vrot.lane.b32.xlu0 %v2007_v31, %s2170_s7 }
0x173e   :  { %v2009_v34 = vpop.eup %2008 }
0x173f   :  { %v1657_v35 = vadd.f32 1.0, %v2009_v34 }
0x1741   :  { %2010 = vrcp.f32 %v1657_v35  ;;  %v1669_v36 = vand.u32 2147483648, %v1657_v35  ;;  %vm1663_vm13 = vweird.f32 %v1657_v35  ;;  %v1667_v43 = vand.u32 2147483647, %v1657_v35 }
0x1743   :  { %v1670_v53 = vor.u32 1.1754944e-38, %v1669_v36  ;;  %vm1668_vm15 = vcmp.eq.f32.partialorder %v1667_v43, 8.507059e+37 }
0x1747   :  { %v2011_v37 = vpop.eup %2010 }
0x1748   :  { %v1659_v38 = vmul.f32 %v2011_v37, %v1657_v35  ;;  %vm1664_vm12 = vweird.f32 %v2011_v37 }
0x1749   :  { %vm1665_vm14 = vmor %vm1663_vm13, %vm1664_vm12 }
0x174a   :  { %v1660_v40 = vsub.f32 1.0, %v1659_v38 }
0x174c   :  { %v1661_v41 = vmul.f32 %v2011_v37, %v1660_v40 }
0x174e   :  { %v1662_v42 = vadd.f32 %v2011_v37, %v1661_v41 }
0x1750   :  { %v1666_v5 = vsel %vm1665_vm14, %v2011_v37, %v1662_v42 }
0x1751   :  { %v1671_v8 = vsel %vm1668_vm15, %v1670_v53, %v1666_v5 }
0x1752   :  { %v1677_v7 = vmul.f32 %v1675_v12, %v1671_v8 }
0x17af   :  { %v1680_v6 = vpop.permute.xlu0 %1679 }
0x17b0   :  { %v1682_v9 = vmul.f32 %v1680_v6, %v1671_v8 }
0x17b2   :  { %1684 = vrot.lane.b32.xlu1 %v1682_v9, %s2171_s8 }
0x1824   :  { %v1685_v32 = vpop.permute.xlu1 %1684 }
0x1825   :  { %v1687_v13 = vadd.f32 %v1685_v32, %v1677_v7 }
0x1827   :  { %2012 = vtanh.f32 %v1687_v13  ;;  %v1745_v46 = vrot.slane %v1687_v13, 6 }
0x182d   :  { %v2013_v14 = vpop.eup %2012 }
0x182e   :  { %1690 = vrot.lane.b32.xlu2 %v2013_v14, %s2170_s7 }
0x1888   :  { %v1691_v15 = vpop.permute.xlu2 %1690 }
0x1889   :  { %v1693_v16 = vmul.f32 %v1691_v15, %v1671_v8 }
0x188b   :  { %v1695_v17 = vrot.slane %v1693_v16, 4 }
0x188d   :  { %1696 = vrot.lane.b32.xlu0 %v1695_v17, %s2171_s8 }
0x18ff   :  { %v1697_v18 = vpop.permute.xlu0 %1696 }
0x1900   :  { %1915 = vmatmul.msk.f32.vlgmr.msra.gmra.mxu3 %vm340_vm2, %v1697_v18 }
0x1983   :  { %v1717_v19 = vpop.f32.mrf.mxu3 }
0x1984   :  { %v1721_v20 = vrot.slane %v1717_v19, 2 }
0x1986   :  { %v1723_v21 = vadd.f32 %v1721_v20, %v2672_v39 }
0x1988   :  { %2014 = vtanh.f32 %v1723_v21  ;;  %v1916_v22 = vmul.f32 -1.442695, %v1723_v21 }
0x198a   :  { %2016 = vpow2.f32 %v1916_v22 }
0x198e   :  { %v2015_v44 = vpop.eup %2014 }
0x198f   :  { %1749 = vrot.lane.b32.xlu1 %v2015_v44, %s2170_s7 }
0x1990   :  { %v2017_v47 = vpop.eup %2016 }
0x1991   :  { %v1727_v50 = vadd.f32 1.0, %v2017_v47 }
0x1993   :  { %2018 = vrcp.f32 %v1727_v50  ;;  %v1739_v27 = vand.u32 2147483648, %v1727_v50  ;;  %vm1733_vm1 = vweird.f32 %v1727_v50  ;;  %v1737_v10 = vand.u32 2147483647, %v1727_v50 }
0x1995   :  { %v1740_v28 = vor.u32 1.1754944e-38, %v1739_v27  ;;  %vm1738_vm4 = vcmp.eq.f32.partialorder %v1737_v10, 8.507059e+37 }
0x1999   :  { %v2019_v23 = vpop.eup %2018 }
0x199a   :  { %v1729_v51 = vmul.f32 %v2019_v23, %v1727_v50  ;;  %vm1734_vm0 = vweird.f32 %v2019_v23 }
0x199b   :  { %vm1735_vm3 = vmor %vm1733_vm1, %vm1734_vm0 }
0x199c   :  { %v1730_v24 = vsub.f32 1.0, %v1729_v51 }
0x199e   :  { %v1731_v25 = vmul.f32 %v2019_v23, %v1730_v24 }
0x19a0   :  { %v1732_v26 = vadd.f32 %v2019_v23, %v1731_v25 }
0x19a2   :  { %v1736_v39 = vsel %vm1735_vm3, %v2019_v23, %v1732_v26 }
0x19a3   :  { %v1741_v30 = vsel %vm1738_vm4, %v1740_v28, %v1736_v39 }
0x19a4   :  { %v1747_v48 = vmul.f32 %v1745_v46, %v1741_v30 }
0x1a01   :  { %v1750_v29 = vpop.permute.xlu1 %1749 }
0x1a02   :  { %v1752_v45 = vmul.f32 %v1750_v29, %v1741_v30 }
0x1a04   :  { %1754 = vrot.lane.b32.xlu2 %v1752_v45, %s2171_s8 }
0x1a5e   :  { %v1755_v49 = vpop.permute.xlu2 %1754 }
0x1a5f   :  { %v1757_v54 = vadd.f32 %v1755_v49, %v1747_v48 }
0x1a61   :  { %2020 = vtanh.f32 %v1757_v54 }
0x1a67   :  { %v2021_v55 = vpop.eup %2020 }
0x1a68   :  { %1760 = vrot.lane.b32.xlu0 %v2021_v55, %s2170_s7 }
0x1ada   :  { %v1761_v4 = vpop.permute.xlu0 %1760 }
0x1adb   :  { %v1763_v52 = vmul.f32 %v1761_v4, %v1741_v30 }
0x1add   :  { %v1773_v58 = vrot.slane %v1763_v52, 6 }
0x1adf   :  { %1774 = vrot.lane.b32.xlu1 %v1773_v58, %s2171_s8 }
0x1b51   :  { %v1775_v11 = vpop.permute.xlu1 %1774 }
0x1b52   :  { %1917 = vmatmul.msk.f32.vlgmr.msra.gmra.mxu1 %vm340_vm2, %v1775_v11 }
0x1bcf   :  { %v1795_v60 = vpop.f32.mrf.mxu1 }
0x1bd0   :  { %v1796_v61 = vadd.f32 %v1957_v59, %v1795_v60 }
0x1bd2   :  { %1799 = vst.msk [vmem:[#allocation10] sm:$0x3] %vm1798_vm5, %v1796_v61 }
0x1bd3   :  { %1810 = dma.vmem_to_hbm [thread:$0]  %s1806_s12, 32, %s1808_s9, [#allocation4]  }
0x1bd4   :  { %2159 = dma.done.wait [#allocation4], 32  }
0x1bd5   :  { %2160 = vsyncadd [#allocation4], 4294967264 }
0x1bd6   :  { %1815 = vsyncpa [#allocation3], 1 }
0x1bd7   :  { %1816 = vsyncpa [#allocation6], 1 }
0x1bd8   :  { %1817 = vsyncpa [#allocation9], 1 }
0x1bd9   :  { %1818 = vsyncpa [#allocation4], 1 }

</bundles_post_ra>
